<compile_context>
chip_gen: v6e
topology: v6e:2x2x1
jax: 0.10.0
libtpu: 0.0.40
codegen_flags: <defaults>
</compile_context>

<pallas_src>
import functools

import jax
import jax.numpy as jnp
import numpy as np
from jax.experimental import pallas as pl
from jax.experimental.pallas import tpu as pltpu


def _conv_module_kernel(x_ref, w1_ref, b1_ref, dww_ref,
                        bns_ref, bnh_ref, w2_ref, b2_ref,
                        out_ref, pad_ref, *, Bblk, H, WC, K, P, RT):
    M = Bblk * H

    # ---- pointwise_conv1 (both GLU halves fused in one MXU matmul) + GLU ----
    x = x_ref[...].reshape(M, WC)                                    # (M, WC)
    r = jnp.dot(x, w1_ref[...], preferred_element_type=jnp.float32) + b1_ref[...]
    glu = r[:, :WC] * jax.nn.sigmoid(r[:, WC:])                      # (M, WC)

    # ---- depthwise KxK conv (groups=C, SAME) as K accumulated MXU matmuls ----
    # Zero-haloed scratch: per batch element, RT zero rows above/below the H
    # interior rows (RT sublane-aligned, RT >= P).  Re-zeroed every grid step
    # so the kernel stays correct under megacore ("parallel") batch sharding.
    zero_halo = jnp.zeros((Bblk, RT, WC), jnp.float32)
    pad_ref[:, pl.ds(0, RT), :] = zero_halo
    pad_ref[:, pl.ds(RT + H, RT), :] = zero_halo
    pad_ref[:, pl.ds(RT, H), :] = glu.reshape(Bblk, H, WC)

    RO = RT - P                                                      # read row for kh = 0
    # dww_ref[kh] is a block-banded (WC, WC) matrix carrying all kw taps for
    # this kh (SAME-padding W boundary already encoded).  Two accumulators keep
    # the K dependent adds from forming one serial chain.
    acc = [None, None]
    for kh in range(K):
        win = pad_ref[:, pl.ds(RO + kh, H), :].reshape(M, WC)        # (M, WC)
        part = jnp.dot(win, dww_ref[kh], preferred_element_type=jnp.float32)
        s = kh & 1
        acc[s] = part if acc[s] is None else acc[s] + part
    conv = acc[0] if acc[1] is None else acc[0] + acc[1]

    # ---- BatchNorm2d (inference, folded; depthwise bias folded in) + ReLU ----
    y = jnp.maximum(conv * bns_ref[...] + bnh_ref[...], 0.0)

    # ---- pointwise_conv2 (block-diagonal matmul) ----
    o = jnp.dot(y, w2_ref[...], preferred_element_type=jnp.float32) + b2_ref[...]
    out_ref[...] = o.reshape(Bblk, H, WC)                            # lane-dense store


def _pick_bblk(B, H, target_rows=128):
    """Largest divisor of B such that Bblk*H stays near the MXU row target."""
    best = 1
    for cand in range(1, B + 1):
        if B % cand == 0 and cand * H <= max(target_rows, H):
            best = cand
    return best


def conv_module_forward(x, kparams, *, kernel_size=15, block_batch=None):
    """x: (B, H, W, C) float32 NHWC. Returns (B, H, W, C) float32 NHWC."""
    B, H, W, C = x.shape
    K = kernel_size
    assert (K - 1) % 2 == 0            # causal=False branch only
    P = (K - 1) // 2
    WC = W * C
    RT = ((P + 7) // 8) * 8            # sublane-aligned halo depth (>= P)
    Bblk = block_batch if block_batch is not None else _pick_bblk(B, H)
    assert B % Bblk == 0

    x2 = x.reshape(B, H, WC)           # lane-dense view

    kern = functools.partial(_conv_module_kernel,
                             Bblk=Bblk, H=H, WC=WC, K=K, P=P, RT=RT)

    def full_spec(arr):
        nd = arr.ndim
        return pl.BlockSpec(arr.shape, lambda b, _nd=nd: (0,) * _nd)

    grid_spec = pltpu.PrefetchScalarGridSpec(
        num_scalar_prefetch=0,
        grid=(B // Bblk,),
        in_specs=[pl.BlockSpec((Bblk, H, WC), lambda b: (b, 0, 0))]
                 + [full_spec(p) for p in kparams],
        out_specs=pl.BlockSpec((Bblk, H, WC), lambda b: (b, 0, 0)),
        scratch_shapes=[pltpu.VMEM((Bblk, RT + H + RT, WC), jnp.float32)],
    )

    out2 = pl.pallas_call(
        kern,
        out_shape=jax.ShapeDtypeStruct((B, H, WC), jnp.float32),
        grid_spec=grid_spec,
        compiler_params=pltpu.CompilerParams(
            dimension_semantics=("parallel",)),   # batch blocks are independent
    )(x2, *kparams)
    return out2.reshape(B, H, W, C)


# ---------------------------------------------------------------------------
# Deterministic parameter construction (synthetic; mirrors the nn.Module shapes)
# ---------------------------------------------------------------------------
def init_torch_like_params(key, C, K):
    ks = jax.random.split(key, 10)
    s_pw = 1.0 / jnp.sqrt(jnp.float32(C))
    s_dw = 1.0 / jnp.float32(K)
    w1 = jax.random.normal(ks[0], (2 * C, C), jnp.float32) * s_pw   # Conv2d(C,2C,1) weight (squeezed)
    b1 = jax.random.normal(ks[1], (2 * C,), jnp.float32) * 0.1
    dw_w = jax.random.normal(ks[2], (C, K, K), jnp.float32) * s_dw  # Conv2d(C,C,K,groups=C) weight (squeezed)
    dw_b = jax.random.normal(ks[3], (C,), jnp.float32) * 0.1
    gamma = 1.0 + 0.1 * jax.random.normal(ks[4], (C,), jnp.float32)  # BatchNorm2d params / stats
    beta = 0.1 * jax.random.normal(ks[5], (C,), jnp.float32)
    r_mean = 0.1 * jax.random.normal(ks[6], (C,), jnp.float32)
    r_var = jax.random.uniform(ks[7], (C,), jnp.float32, minval=0.5, maxval=1.5)
    w2 = jax.random.normal(ks[8], (C, C), jnp.float32) * s_pw       # Conv2d(C,C,1) weight (squeezed)
    b2 = jax.random.normal(ks[9], (C,), jnp.float32) * 0.1
    return (w1, b1, dw_w, dw_b, gamma, beta, r_mean, r_var, w2, b2)


def to_kernel_params(raw, W, eps=1e-5):
    """Repack module params into the lane-dense (W*C) kernel layout."""
    w1, b1, dw_w, dw_b, gamma, beta, r_mean, r_var, w2, b2 = raw
    C = w2.shape[0]
    K = dw_w.shape[-1]
    P = (K - 1) // 2
    WC = W * C
    eyeW = jnp.eye(W, dtype=jnp.float32)
    eyeC = jnp.eye(C, dtype=jnp.float32)

    # pointwise_conv1: both GLU halves fused into one (WC, 2*WC) block-diag weight
    w1a = w1[:C].T                                                   # (C_in, C_out) linear half
    w1b = w1[C:].T                                                   # gate half
    w1_big = jnp.concatenate([jnp.kron(eyeW, w1a), jnp.kron(eyeW, w1b)], axis=1)
    b1_big = jnp.concatenate([jnp.tile(b1[:C], W), jnp.tile(b1[C:], W)]).reshape(1, 2 * WC)

    # depthwise: K block-banded (WC, WC) matrices, one per kh.
    #   dw_big[kh, wi*C + c, wo*C + c] = dw_w[c, kh, wi - wo + P]  (0 otherwise)
    # which encodes both the per-channel kw taps and the SAME-padding W boundary
    # (out-of-range input columns simply don't exist in the matmul).
    wi = jnp.arange(W)
    wo = jnp.arange(W)
    kw = wi[:, None] - wo[None, :] + P                               # (W_in, W_out)
    valid = (kw >= 0) & (kw < K)
    kw_c = jnp.clip(kw, 0, K - 1)
    band = dw_w[:, :, kw_c]                                          # (C, K, W_in, W_out)
    band = jnp.where(valid[None, None], band, 0.0)
    band = jnp.transpose(band, (1, 2, 3, 0))                         # (K, W_in, W_out, C)
    dw_big = jnp.einsum('kabc,cd->kacbd', band, eyeC).reshape(K, WC, WC)
    dw_big = dw_big.astype(jnp.float32)

    # BatchNorm (inference) folded to scale/shift; depthwise bias folded into shift.
    scale = gamma / jnp.sqrt(r_var + eps)
    shift = beta + (dw_b - r_mean) * scale
    bns_big = jnp.tile(scale, W).reshape(1, WC)
    bnh_big = jnp.tile(shift, W).reshape(1, WC)

    # pointwise_conv2: (WC, WC) block-diag weight
    w2_big = jnp.kron(eyeW, w2.T)
    b2_big = jnp.tile(b2, W).reshape(1, WC)

    return (w1_big, b1_big, dw_big, bns_big, bnh_big, w2_big, b2_big)


# ---------------------------------------------------------------------------
# Pure-JAX reference (same math, no Pallas) for a correctness check
# ---------------------------------------------------------------------------
def reference_forward(x, raw, K, eps=1e-5):
    w1, b1, dw_w, dw_b, gamma, beta, r_mean, r_var, w2, b2 = raw
    B, H, W, C = x.shape
    P = (K - 1) // 2
    y = jnp.einsum('bhwc,oc->bhwo', x, w1) + b1                      # pointwise_conv1
    a, g = y[..., :C], y[..., C:]
    z = a * jax.nn.sigmoid(g)                                        # GLU
    zp = jnp.pad(z, ((0, 0), (P, P), (P, P), (0, 0)))
    out = jnp.zeros((B, H, W, C), jnp.float32) + dw_b
    for kh in range(K):
        for kw in range(K):
            out = out + zp[:, kh:kh + H, kw:kw + W, :] * dw_w[:, kh, kw]
    out = (out - r_mean) / jnp.sqrt(r_var + eps) * gamma + beta      # BN (inference)
    out = jnp.maximum(out, 0.0)                                      # ReLU
    out = jnp.einsum('bhwc,oc->bhwo', out, w2) + b2                  # pointwise_conv2
    return out


if __name__ == "__main__":
    B, H, W, C, K = 2, 16, 16, 8, 15

    key = jax.random.PRNGKey(0)
    k_x, k_p = jax.random.split(key)
    x = jax.random.normal(k_x, (B, H, W, C), jnp.float32)

    raw_params = init_torch_like_params(k_p, C, K)
    kernel_params = to_kernel_params(raw_params, W)

    out = conv_module_forward(x, kernel_params, kernel_size=K)
    out = jax.block_until_ready(out)

    ref = reference_forward(x, raw_params, K)
    np.testing.assert_allclose(np.asarray(out), np.asarray(ref), rtol=2e-3, atol=2e-3)

    print("KERNEL_OK")
</pallas_src>

<mosaic_0001>
module attributes {stable_mosaic.version = 11 : i64} {
  func.func @_conv_module_kernel(%arg0: i32, %arg1: memref<2x16x128xf32, #tpu.memory_space<vmem>>, %arg2: memref<128x256xf32, #tpu.memory_space<vmem>>, %arg3: memref<1x256xf32, #tpu.memory_space<vmem>>, %arg4: memref<15x128x128xf32, #tpu.memory_space<vmem>>, %arg5: memref<1x128xf32, #tpu.memory_space<vmem>>, %arg6: memref<1x128xf32, #tpu.memory_space<vmem>>, %arg7: memref<128x128xf32, #tpu.memory_space<vmem>>, %arg8: memref<1x128xf32, #tpu.memory_space<vmem>>, %arg9: memref<2x16x128xf32, #tpu.memory_space<vmem>>, %arg10: memref<2x32x128xf32, #tpu.memory_space<vmem>>) attributes {dimension_semantics = [#tpu.dimension_semantics<parallel>], iteration_bounds = array<i64: 1>, scalar_prefetch = 0 : i64, scratch_operands = 1 : i64, tpu.core_type = #tpu.core_type<tc>, window_params = [{transform_indices = @transform_0, window_bounds = array<i64: 2, 16, 128>}, {pipeline_mode = #tpu.pipeline_mode<synchronous>, transform_indices = @transform_1, window_bounds = array<i64: 128, 256>}, {pipeline_mode = #tpu.pipeline_mode<synchronous>, transform_indices = @transform_2, window_bounds = array<i64: 1, 256>}, {pipeline_mode = #tpu.pipeline_mode<synchronous>, transform_indices = @transform_3, window_bounds = array<i64: 15, 128, 128>}, {pipeline_mode = #tpu.pipeline_mode<synchronous>, transform_indices = @transform_4, window_bounds = array<i64: 1, 128>}, {pipeline_mode = #tpu.pipeline_mode<synchronous>, transform_indices = @transform_5, window_bounds = array<i64: 1, 128>}, {pipeline_mode = #tpu.pipeline_mode<synchronous>, transform_indices = @transform_6, window_bounds = array<i64: 128, 128>}, {pipeline_mode = #tpu.pipeline_mode<synchronous>, transform_indices = @transform_7, window_bounds = array<i64: 1, 128>}, {transform_indices = @transform_8, window_bounds = array<i64: 2, 16, 128>}]} {
    %c0 = arith.constant 0 : index
    %c0_0 = arith.constant 0 : index
    %c0_1 = arith.constant 0 : index
    %0 = vector.load %arg1[%c0, %c0_0, %c0_1] : memref<2x16x128xf32, #tpu.memory_space<vmem>>, vector<2x16x128xf32>
    %1 = vector.shape_cast %0 : vector<2x16x128xf32> to vector<32x128xf32>
    %c0_2 = arith.constant 0 : index
    %c0_3 = arith.constant 0 : index
    %2 = vector.load %arg2[%c0_2, %c0_3] : memref<128x256xf32, #tpu.memory_space<vmem>>, vector<128x256xf32>
    %cst = arith.constant dense<0.000000e+00> : vector<32x256xf32>
    %3 = tpu.matmul %1, %2, %cst {dimension_numbers = #tpu.dot_dimension_numbers<[1], [0], [0], [1], [0, 0, 1, 1], [], []>} : vector<32x128xf32>, vector<128x256xf32>, vector<32x256xf32> -> vector<32x256xf32>
    %c0_4 = arith.constant 0 : index
    %c0_5 = arith.constant 0 : index
    %4 = vector.load %arg3[%c0_4, %c0_5] : memref<1x256xf32, #tpu.memory_space<vmem>>, vector<1x256xf32>
    %5 = vector.broadcast %4 : vector<1x256xf32> to vector<32x256xf32>
    %6 = arith.addf %3, %5 : vector<32x256xf32>
    %7 = vector.extract_strided_slice %6 {offsets = [0, 0], sizes = [32, 128], strides = [1, 1]} : vector<32x256xf32> to vector<32x128xf32>
    %8 = vector.extract_strided_slice %6 {offsets = [0, 128], sizes = [32, 128], strides = [1, 1]} : vector<32x256xf32> to vector<32x128xf32>
    %9 = arith.negf %8 : vector<32x128xf32>
    %10 = math.exp %9 : vector<32x128xf32>
    %cst_6 = arith.constant 1.000000e+00 : f32
    %11 = vector.broadcast %cst_6 : f32 to vector<32x128xf32>
    %12 = arith.addf %11, %10 : vector<32x128xf32>
    %13 = arith.divf %11, %12 : vector<32x128xf32>
    %14 = arith.mulf %7, %13 : vector<32x128xf32>
    %cst_7 = arith.constant 0.000000e+00 : f32
    %15 = vector.broadcast %cst_7 : f32 to vector<2x8x128xf32>
    %c0_8 = arith.constant 0 : index
    %c0_9 = arith.constant 0 : index
    %c0_10 = arith.constant 0 : index
    %16 = vector.load %arg10[%c0_8, %c0_9, %c0_10] : memref<2x32x128xf32, #tpu.memory_space<vmem>>, vector<2x8x128xf32>
    tpu.vector_store %arg10[%c0_8, %c0_9, %c0_10], %15 {strides = array<i32>} : memref<2x32x128xf32, #tpu.memory_space<vmem>>, vector<2x8x128xf32>,
    %c0_11 = arith.constant 0 : index
    %c24 = arith.constant 24 : index
    %c0_12 = arith.constant 0 : index
    %17 = vector.load %arg10[%c0_11, %c24, %c0_12] : memref<2x32x128xf32, #tpu.memory_space<vmem>>, vector<2x8x128xf32>
    tpu.vector_store %arg10[%c0_11, %c24, %c0_12], %15 {strides = array<i32>} : memref<2x32x128xf32, #tpu.memory_space<vmem>>, vector<2x8x128xf32>,
    %18 = vector.shape_cast %14 : vector<32x128xf32> to vector<2x16x128xf32>
    %c0_13 = arith.constant 0 : index
    %c8 = arith.constant 8 : index
    %c0_14 = arith.constant 0 : index
    %19 = vector.load %arg10[%c0_13, %c8, %c0_14] : memref<2x32x128xf32, #tpu.memory_space<vmem>>, vector<2x16x128xf32>
    tpu.vector_store %arg10[%c0_13, %c8, %c0_14], %18 {strides = array<i32>} : memref<2x32x128xf32, #tpu.memory_space<vmem>>, vector<2x16x128xf32>,
    %c0_15 = arith.constant 0 : index
    %c1 = arith.constant 1 : index
    %c0_16 = arith.constant 0 : index
    %20 = vector.load %arg10[%c0_15, %c1, %c0_16] : memref<2x32x128xf32, #tpu.memory_space<vmem>>, vector<2x16x128xf32>
    %21 = vector.shape_cast %20 : vector<2x16x128xf32> to vector<32x128xf32>
    %c0_17 = arith.constant 0 : index
    %c0_18 = arith.constant 0 : index
    %c0_19 = arith.constant 0 : index
    %22 = vector.load %arg4[%c0_17, %c0_18, %c0_19] : memref<15x128x128xf32, #tpu.memory_space<vmem>>, vector<1x128x128xf32>
    %23 = vector.shape_cast %22 : vector<1x128x128xf32> to vector<128x128xf32>
    %cst_20 = arith.constant dense<0.000000e+00> : vector<32x128xf32>
    %24 = tpu.matmul %21, %23, %cst_20 {dimension_numbers = #tpu.dot_dimension_numbers<[1], [0], [0], [1], [0, 0, 1, 1], [], []>} : vector<32x128xf32>, vector<128x128xf32>, vector<32x128xf32> -> vector<32x128xf32>
    %c0_21 = arith.constant 0 : index
    %c2 = arith.constant 2 : index
    %c0_22 = arith.constant 0 : index
    %25 = vector.load %arg10[%c0_21, %c2, %c0_22] : memref<2x32x128xf32, #tpu.memory_space<vmem>>, vector<2x16x128xf32>
    %26 = vector.shape_cast %25 : vector<2x16x128xf32> to vector<32x128xf32>
    %c1_23 = arith.constant 1 : index
    %c0_24 = arith.constant 0 : index
    %c0_25 = arith.constant 0 : index
    %27 = vector.load %arg4[%c1_23, %c0_24, %c0_25] : memref<15x128x128xf32, #tpu.memory_space<vmem>>, vector<1x128x128xf32>
    %28 = vector.shape_cast %27 : vector<1x128x128xf32> to vector<128x128xf32>
    %cst_26 = arith.constant dense<0.000000e+00> : vector<32x128xf32>
    %29 = tpu.matmul %26, %28, %cst_26 {dimension_numbers = #tpu.dot_dimension_numbers<[1], [0], [0], [1], [0, 0, 1, 1], [], []>} : vector<32x128xf32>, vector<128x128xf32>, vector<32x128xf32> -> vector<32x128xf32>
    %c0_27 = arith.constant 0 : index
    %c3 = arith.constant 3 : index
    %c0_28 = arith.constant 0 : index
    %30 = vector.load %arg10[%c0_27, %c3, %c0_28] : memref<2x32x128xf32, #tpu.memory_space<vmem>>, vector<2x16x128xf32>
    %31 = vector.shape_cast %30 : vector<2x16x128xf32> to vector<32x128xf32>
    %c2_29 = arith.constant 2 : index
    %c0_30 = arith.constant 0 : index
    %c0_31 = arith.constant 0 : index
    %32 = vector.load %arg4[%c2_29, %c0_30, %c0_31] : memref<15x128x128xf32, #tpu.memory_space<vmem>>, vector<1x128x128xf32>
    %33 = vector.shape_cast %32 : vector<1x128x128xf32> to vector<128x128xf32>
    %cst_32 = arith.constant dense<0.000000e+00> : vector<32x128xf32>
    %34 = tpu.matmul %31, %33, %cst_32 {dimension_numbers = #tpu.dot_dimension_numbers<[1], [0], [0], [1], [0, 0, 1, 1], [], []>} : vector<32x128xf32>, vector<128x128xf32>, vector<32x128xf32> -> vector<32x128xf32>
    %35 = arith.addf %24, %34 : vector<32x128xf32>
    %c0_33 = arith.constant 0 : index
    %c4 = arith.constant 4 : index
    %c0_34 = arith.constant 0 : index
    %36 = vector.load %arg10[%c0_33, %c4, %c0_34] : memref<2x32x128xf32, #tpu.memory_space<vmem>>, vector<2x16x128xf32>
    %37 = vector.shape_cast %36 : vector<2x16x128xf32> to vector<32x128xf32>
    %c3_35 = arith.constant 3 : index
    %c0_36 = arith.constant 0 : index
    %c0_37 = arith.constant 0 : index
    %38 = vector.load %arg4[%c3_35, %c0_36, %c0_37] : memref<15x128x128xf32, #tpu.memory_space<vmem>>, vector<1x128x128xf32>
    %39 = vector.shape_cast %38 : vector<1x128x128xf32> to vector<128x128xf32>
    %cst_38 = arith.constant dense<0.000000e+00> : vector<32x128xf32>
    %40 = tpu.matmul %37, %39, %cst_38 {dimension_numbers = #tpu.dot_dimension_numbers<[1], [0], [0], [1], [0, 0, 1, 1], [], []>} : vector<32x128xf32>, vector<128x128xf32>, vector<32x128xf32> -> vector<32x128xf32>
    %41 = arith.addf %29, %40 : vector<32x128xf32>
    %c0_39 = arith.constant 0 : index
    %c5 = arith.constant 5 : index
    %c0_40 = arith.constant 0 : index
    %42 = vector.load %arg10[%c0_39, %c5, %c0_40] : memref<2x32x128xf32, #tpu.memory_space<vmem>>, vector<2x16x128xf32>
    %43 = vector.shape_cast %42 : vector<2x16x128xf32> to vector<32x128xf32>
    %c4_41 = arith.constant 4 : index
    %c0_42 = arith.constant 0 : index
    %c0_43 = arith.constant 0 : index
    %44 = vector.load %arg4[%c4_41, %c0_42, %c0_43] : memref<15x128x128xf32, #tpu.memory_space<vmem>>, vector<1x128x128xf32>
    %45 = vector.shape_cast %44 : vector<1x128x128xf32> to vector<128x128xf32>
    %cst_44 = arith.constant dense<0.000000e+00> : vector<32x128xf32>
    %46 = tpu.matmul %43, %45, %cst_44 {dimension_numbers = #tpu.dot_dimension_numbers<[1], [0], [0], [1], [0, 0, 1, 1], [], []>} : vector<32x128xf32>, vector<128x128xf32>, vector<32x128xf32> -> vector<32x128xf32>
    %47 = arith.addf %35, %46 : vector<32x128xf32>
    %c0_45 = arith.constant 0 : index
    %c6 = arith.constant 6 : index
    %c0_46 = arith.constant 0 : index
    %48 = vector.load %arg10[%c0_45, %c6, %c0_46] : memref<2x32x128xf32, #tpu.memory_space<vmem>>, vector<2x16x128xf32>
    %49 = vector.shape_cast %48 : vector<2x16x128xf32> to vector<32x128xf32>
    %c5_47 = arith.constant 5 : index
    %c0_48 = arith.constant 0 : index
    %c0_49 = arith.constant 0 : index
    %50 = vector.load %arg4[%c5_47, %c0_48, %c0_49] : memref<15x128x128xf32, #tpu.memory_space<vmem>>, vector<1x128x128xf32>
    %51 = vector.shape_cast %50 : vector<1x128x128xf32> to vector<128x128xf32>
    %cst_50 = arith.constant dense<0.000000e+00> : vector<32x128xf32>
    %52 = tpu.matmul %49, %51, %cst_50 {dimension_numbers = #tpu.dot_dimension_numbers<[1], [0], [0], [1], [0, 0, 1, 1], [], []>} : vector<32x128xf32>, vector<128x128xf32>, vector<32x128xf32> -> vector<32x128xf32>
    %53 = arith.addf %41, %52 : vector<32x128xf32>
    %c0_51 = arith.constant 0 : index
    %c7 = arith.constant 7 : index
    %c0_52 = arith.constant 0 : index
    %54 = vector.load %arg10[%c0_51, %c7, %c0_52] : memref<2x32x128xf32, #tpu.memory_space<vmem>>, vector<2x16x128xf32>
    %55 = vector.shape_cast %54 : vector<2x16x128xf32> to vector<32x128xf32>
    %c6_53 = arith.constant 6 : index
    %c0_54 = arith.constant 0 : index
    %c0_55 = arith.constant 0 : index
    %56 = vector.load %arg4[%c6_53, %c0_54, %c0_55] : memref<15x128x128xf32, #tpu.memory_space<vmem>>, vector<1x128x128xf32>
    %57 = vector.shape_cast %56 : vector<1x128x128xf32> to vector<128x128xf32>
    %cst_56 = arith.constant dense<0.000000e+00> : vector<32x128xf32>
    %58 = tpu.matmul %55, %57, %cst_56 {dimension_numbers = #tpu.dot_dimension_numbers<[1], [0], [0], [1], [0, 0, 1, 1], [], []>} : vector<32x128xf32>, vector<128x128xf32>, vector<32x128xf32> -> vector<32x128xf32>
    %59 = arith.addf %47, %58 : vector<32x128xf32>
    %c0_57 = arith.constant 0 : index
    %c8_58 = arith.constant 8 : index
    %c0_59 = arith.constant 0 : index
    %60 = vector.load %arg10[%c0_57, %c8_58, %c0_59] : memref<2x32x128xf32, #tpu.memory_space<vmem>>, vector<2x16x128xf32>
    %61 = vector.shape_cast %60 : vector<2x16x128xf32> to vector<32x128xf32>
    %c7_60 = arith.constant 7 : index
    %c0_61 = arith.constant 0 : index
    %c0_62 = arith.constant 0 : index
    %62 = vector.load %arg4[%c7_60, %c0_61, %c0_62] : memref<15x128x128xf32, #tpu.memory_space<vmem>>, vector<1x128x128xf32>
    %63 = vector.shape_cast %62 : vector<1x128x128xf32> to vector<128x128xf32>
    %cst_63 = arith.constant dense<0.000000e+00> : vector<32x128xf32>
    %64 = tpu.matmul %61, %63, %cst_63 {dimension_numbers = #tpu.dot_dimension_numbers<[1], [0], [0], [1], [0, 0, 1, 1], [], []>} : vector<32x128xf32>, vector<128x128xf32>, vector<32x128xf32> -> vector<32x128xf32>
    %65 = arith.addf %53, %64 : vector<32x128xf32>
    %c0_64 = arith.constant 0 : index
    %c9 = arith.constant 9 : index
    %c0_65 = arith.constant 0 : index
    %66 = vector.load %arg10[%c0_64, %c9, %c0_65] : memref<2x32x128xf32, #tpu.memory_space<vmem>>, vector<2x16x128xf32>
    %67 = vector.shape_cast %66 : vector<2x16x128xf32> to vector<32x128xf32>
    %c8_66 = arith.constant 8 : index
    %c0_67 = arith.constant 0 : index
    %c0_68 = arith.constant 0 : index
    %68 = vector.load %arg4[%c8_66, %c0_67, %c0_68] : memref<15x128x128xf32, #tpu.memory_space<vmem>>, vector<1x128x128xf32>
    %69 = vector.shape_cast %68 : vector<1x128x128xf32> to vector<128x128xf32>
    %cst_69 = arith.constant dense<0.000000e+00> : vector<32x128xf32>
    %70 = tpu.matmul %67, %69, %cst_69 {dimension_numbers = #tpu.dot_dimension_numbers<[1], [0], [0], [1], [0, 0, 1, 1], [], []>} : vector<32x128xf32>, vector<128x128xf32>, vector<32x128xf32> -> vector<32x128xf32>
    %71 = arith.addf %59, %70 : vector<32x128xf32>
    %c0_70 = arith.constant 0 : index
    %c10 = arith.constant 10 : index
    %c0_71 = arith.constant 0 : index
    %72 = vector.load %arg10[%c0_70, %c10, %c0_71] : memref<2x32x128xf32, #tpu.memory_space<vmem>>, vector<2x16x128xf32>
    %73 = vector.shape_cast %72 : vector<2x16x128xf32> to vector<32x128xf32>
    %c9_72 = arith.constant 9 : index
    %c0_73 = arith.constant 0 : index
    %c0_74 = arith.constant 0 : index
    %74 = vector.load %arg4[%c9_72, %c0_73, %c0_74] : memref<15x128x128xf32, #tpu.memory_space<vmem>>, vector<1x128x128xf32>
    %75 = vector.shape_cast %74 : vector<1x128x128xf32> to vector<128x128xf32>
    %cst_75 = arith.constant dense<0.000000e+00> : vector<32x128xf32>
    %76 = tpu.matmul %73, %75, %cst_75 {dimension_numbers = #tpu.dot_dimension_numbers<[1], [0], [0], [1], [0, 0, 1, 1], [], []>} : vector<32x128xf32>, vector<128x128xf32>, vector<32x128xf32> -> vector<32x128xf32>
    %77 = arith.addf %65, %76 : vector<32x128xf32>
    %c0_76 = arith.constant 0 : index
    %c11 = arith.constant 11 : index
    %c0_77 = arith.constant 0 : index
    %78 = vector.load %arg10[%c0_76, %c11, %c0_77] : memref<2x32x128xf32, #tpu.memory_space<vmem>>, vector<2x16x128xf32>
    %79 = vector.shape_cast %78 : vector<2x16x128xf32> to vector<32x128xf32>
    %c10_78 = arith.constant 10 : index
    %c0_79 = arith.constant 0 : index
    %c0_80 = arith.constant 0 : index
    %80 = vector.load %arg4[%c10_78, %c0_79, %c0_80] : memref<15x128x128xf32, #tpu.memory_space<vmem>>, vector<1x128x128xf32>
    %81 = vector.shape_cast %80 : vector<1x128x128xf32> to vector<128x128xf32>
    %cst_81 = arith.constant dense<0.000000e+00> : vector<32x128xf32>
    %82 = tpu.matmul %79, %81, %cst_81 {dimension_numbers = #tpu.dot_dimension_numbers<[1], [0], [0], [1], [0, 0, 1, 1], [], []>} : vector<32x128xf32>, vector<128x128xf32>, vector<32x128xf32> -> vector<32x128xf32>
    %83 = arith.addf %71, %82 : vector<32x128xf32>
    %c0_82 = arith.constant 0 : index
    %c12 = arith.constant 12 : index
    %c0_83 = arith.constant 0 : index
    %84 = vector.load %arg10[%c0_82, %c12, %c0_83] : memref<2x32x128xf32, #tpu.memory_space<vmem>>, vector<2x16x128xf32>
    %85 = vector.shape_cast %84 : vector<2x16x128xf32> to vector<32x128xf32>
    %c11_84 = arith.constant 11 : index
    %c0_85 = arith.constant 0 : index
    %c0_86 = arith.constant 0 : index
    %86 = vector.load %arg4[%c11_84, %c0_85, %c0_86] : memref<15x128x128xf32, #tpu.memory_space<vmem>>, vector<1x128x128xf32>
    %87 = vector.shape_cast %86 : vector<1x128x128xf32> to vector<128x128xf32>
    %cst_87 = arith.constant dense<0.000000e+00> : vector<32x128xf32>
    %88 = tpu.matmul %85, %87, %cst_87 {dimension_numbers = #tpu.dot_dimension_numbers<[1], [0], [0], [1], [0, 0, 1, 1], [], []>} : vector<32x128xf32>, vector<128x128xf32>, vector<32x128xf32> -> vector<32x128xf32>
    %89 = arith.addf %77, %88 : vector<32x128xf32>
    %c0_88 = arith.constant 0 : index
    %c13 = arith.constant 13 : index
    %c0_89 = arith.constant 0 : index
    %90 = vector.load %arg10[%c0_88, %c13, %c0_89] : memref<2x32x128xf32, #tpu.memory_space<vmem>>, vector<2x16x128xf32>
    %91 = vector.shape_cast %90 : vector<2x16x128xf32> to vector<32x128xf32>
    %c12_90 = arith.constant 12 : index
    %c0_91 = arith.constant 0 : index
    %c0_92 = arith.constant 0 : index
    %92 = vector.load %arg4[%c12_90, %c0_91, %c0_92] : memref<15x128x128xf32, #tpu.memory_space<vmem>>, vector<1x128x128xf32>
    %93 = vector.shape_cast %92 : vector<1x128x128xf32> to vector<128x128xf32>
    %cst_93 = arith.constant dense<0.000000e+00> : vector<32x128xf32>
    %94 = tpu.matmul %91, %93, %cst_93 {dimension_numbers = #tpu.dot_dimension_numbers<[1], [0], [0], [1], [0, 0, 1, 1], [], []>} : vector<32x128xf32>, vector<128x128xf32>, vector<32x128xf32> -> vector<32x128xf32>
    %95 = arith.addf %83, %94 : vector<32x128xf32>
    %c0_94 = arith.constant 0 : index
    %c14 = arith.constant 14 : index
    %c0_95 = arith.constant 0 : index
    %96 = vector.load %arg10[%c0_94, %c14, %c0_95] : memref<2x32x128xf32, #tpu.memory_space<vmem>>, vector<2x16x128xf32>
    %97 = vector.shape_cast %96 : vector<2x16x128xf32> to vector<32x128xf32>
    %c13_96 = arith.constant 13 : index
    %c0_97 = arith.constant 0 : index
    %c0_98 = arith.constant 0 : index
    %98 = vector.load %arg4[%c13_96, %c0_97, %c0_98] : memref<15x128x128xf32, #tpu.memory_space<vmem>>, vector<1x128x128xf32>
    %99 = vector.shape_cast %98 : vector<1x128x128xf32> to vector<128x128xf32>
    %cst_99 = arith.constant dense<0.000000e+00> : vector<32x128xf32>
    %100 = tpu.matmul %97, %99, %cst_99 {dimension_numbers = #tpu.dot_dimension_numbers<[1], [0], [0], [1], [0, 0, 1, 1], [], []>} : vector<32x128xf32>, vector<128x128xf32>, vector<32x128xf32> -> vector<32x128xf32>
    %101 = arith.addf %89, %100 : vector<32x128xf32>
    %c0_100 = arith.constant 0 : index
    %c15 = arith.constant 15 : index
    %c0_101 = arith.constant 0 : index
    %102 = vector.load %arg10[%c0_100, %c15, %c0_101] : memref<2x32x128xf32, #tpu.memory_space<vmem>>, vector<2x16x128xf32>
    %103 = vector.shape_cast %102 : vector<2x16x128xf32> to vector<32x128xf32>
    %c14_102 = arith.constant 14 : index
    %c0_103 = arith.constant 0 : index
    %c0_104 = arith.constant 0 : index
    %104 = vector.load %arg4[%c14_102, %c0_103, %c0_104] : memref<15x128x128xf32, #tpu.memory_space<vmem>>, vector<1x128x128xf32>
    %105 = vector.shape_cast %104 : vector<1x128x128xf32> to vector<128x128xf32>
    %cst_105 = arith.constant dense<0.000000e+00> : vector<32x128xf32>
    %106 = tpu.matmul %103, %105, %cst_105 {dimension_numbers = #tpu.dot_dimension_numbers<[1], [0], [0], [1], [0, 0, 1, 1], [], []>} : vector<32x128xf32>, vector<128x128xf32>, vector<32x128xf32> -> vector<32x128xf32>
    %107 = arith.addf %95, %106 : vector<32x128xf32>
    %108 = arith.addf %107, %101 : vector<32x128xf32>
    %c0_106 = arith.constant 0 : index
    %c0_107 = arith.constant 0 : index
    %109 = vector.load %arg5[%c0_106, %c0_107] : memref<1x128xf32, #tpu.memory_space<vmem>>, vector<1x128xf32>
    %110 = vector.broadcast %109 : vector<1x128xf32> to vector<32x128xf32>
    %111 = arith.mulf %108, %110 : vector<32x128xf32>
    %c0_108 = arith.constant 0 : index
    %c0_109 = arith.constant 0 : index
    %112 = vector.load %arg6[%c0_108, %c0_109] : memref<1x128xf32, #tpu.memory_space<vmem>>, vector<1x128xf32>
    %113 = vector.broadcast %112 : vector<1x128xf32> to vector<32x128xf32>
    %114 = arith.addf %111, %113 : vector<32x128xf32>
    %cst_110 = arith.constant 0.000000e+00 : f32
    %115 = vector.broadcast %cst_110 : f32 to vector<32x128xf32>
    %116 = arith.maximumf %114, %115 : vector<32x128xf32>
    %c0_111 = arith.constant 0 : index
    %c0_112 = arith.constant 0 : index
    %117 = vector.load %arg7[%c0_111, %c0_112] : memref<128x128xf32, #tpu.memory_space<vmem>>, vector<128x128xf32>
    %cst_113 = arith.constant dense<0.000000e+00> : vector<32x128xf32>
    %118 = tpu.matmul %116, %117, %cst_113 {dimension_numbers = #tpu.dot_dimension_numbers<[1], [0], [0], [1], [0, 0, 1, 1], [], []>} : vector<32x128xf32>, vector<128x128xf32>, vector<32x128xf32> -> vector<32x128xf32>
    %c0_114 = arith.constant 0 : index
    %c0_115 = arith.constant 0 : index
    %119 = vector.load %arg8[%c0_114, %c0_115] : memref<1x128xf32, #tpu.memory_space<vmem>>, vector<1x128xf32>
    %120 = vector.broadcast %119 : vector<1x128xf32> to vector<32x128xf32>
    %121 = arith.addf %118, %120 : vector<32x128xf32>
    %122 = vector.shape_cast %121 : vector<32x128xf32> to vector<2x16x128xf32>
    %c0_116 = arith.constant 0 : index
    %c0_117 = arith.constant 0 : index
    %c0_118 = arith.constant 0 : index
    %123 = vector.load %arg9[%c0_116, %c0_117, %c0_118] : memref<2x16x128xf32, #tpu.memory_space<vmem>>, vector<2x16x128xf32>
    tpu.vector_store %arg9[%c0_116, %c0_117, %c0_118], %122 {strides = array<i32>} : memref<2x16x128xf32, #tpu.memory_space<vmem>>, vector<2x16x128xf32>,
    return
  }
  func.func @transform_0(%arg0: i32) -> (i32, i32, i32) {
    %c0_i32 = arith.constant 0 : i32
    %c0_i32_0 = arith.constant 0 : i32
    %c0_i32_1 = arith.constant 0 : i32
    return %arg0, %c0_i32, %c0_i32_0 : i32, i32, i32
  }
  func.func @transform_1(%arg0: i32) -> (i32, i32) {
    %c0_i32 = arith.constant 0 : i32
    %c0_i32_0 = arith.constant 0 : i32
    %c0_i32_1 = arith.constant 0 : i32
    return %c0_i32, %c0_i32_0 : i32, i32
  }
  func.func @transform_2(%arg0: i32) -> (i32, i32) {
    %c0_i32 = arith.constant 0 : i32
    %c0_i32_0 = arith.constant 0 : i32
    %c0_i32_1 = arith.constant 0 : i32
    return %c0_i32, %c0_i32_0 : i32, i32
  }
  func.func @transform_3(%arg0: i32) -> (i32, i32, i32) {
    %c0_i32 = arith.constant 0 : i32
    %c0_i32_0 = arith.constant 0 : i32
    %c0_i32_1 = arith.constant 0 : i32
    %c0_i32_2 = arith.constant 0 : i32
    return %c0_i32, %c0_i32_0, %c0_i32_1 : i32, i32, i32
  }
  func.func @transform_4(%arg0: i32) -> (i32, i32) {
    %c0_i32 = arith.constant 0 : i32
    %c0_i32_0 = arith.constant 0 : i32
    %c0_i32_1 = arith.constant 0 : i32
    return %c0_i32, %c0_i32_0 : i32, i32
  }
  func.func @transform_5(%arg0: i32) -> (i32, i32) {
    %c0_i32 = arith.constant 0 : i32
    %c0_i32_0 = arith.constant 0 : i32
    %c0_i32_1 = arith.constant 0 : i32
    return %c0_i32, %c0_i32_0 : i32, i32
  }
  func.func @transform_6(%arg0: i32) -> (i32, i32) {
    %c0_i32 = arith.constant 0 : i32
    %c0_i32_0 = arith.constant 0 : i32
    %c0_i32_1 = arith.constant 0 : i32
    return %c0_i32, %c0_i32_0 : i32, i32
  }
  func.func @transform_7(%arg0: i32) -> (i32, i32) {
    %c0_i32 = arith.constant 0 : i32
    %c0_i32_0 = arith.constant 0 : i32
    %c0_i32_1 = arith.constant 0 : i32
    return %c0_i32, %c0_i32_0 : i32, i32
  }
  func.func @transform_8(%arg0: i32) -> (i32, i32, i32) {
    %c0_i32 = arith.constant 0 : i32
    %c0_i32_0 = arith.constant 0 : i32
    %c0_i32_1 = arith.constant 0 : i32
    return %arg0, %c0_i32, %c0_i32_0 : i32, i32, i32
  }
}

</mosaic_0001>

<bundles_post_ra>
// kernel: tpu_custom_call.1
= control target key start
LH: loop header
LB: loop body
LE: loop exit
PB: predicated region body
PF: predicated region fallthrough
CT: control target
= control target key end

     0   :  { %13 = vsyncpa [#allocation4], 0  ;;  %s3331_s0 = inlined_call_operand.hbm [shape: f32[2,16,128], index: 0, kind: input, shape index: {}]   ;;  %s3332_s1 = inlined_call_operand.hbm [shape: f32[128,256], index: 1, kind: input, shape index: {}]   ;;  %s3333_s2 = inlined_call_operand.vmem [shape: f32[1,256], index: 2, kind: input, shape index: {}]   ;;  %s3334_s3 = inlined_call_operand.hbm [shape: f32[15,128,128], index: 3, kind: input, shape index: {}]   ;;  %s3335_s4 = inlined_call_operand.vmem [shape: f32[1,128], index: 4, kind: input, shape index: {}]   ;;  %s3336_s5 = inlined_call_operand.vmem [shape: f32[1,128], index: 5, kind: input, shape index: {}]   ;;  %s3337_s6 = inlined_call_operand.hbm [shape: f32[128,128], index: 6, kind: input, shape index: {}]   ;;  %s3338_s7 = inlined_call_operand.vmem [shape: f32[1,128], index: 7, kind: input, shape index: {}]   ;;  %s3339_s8 = inlined_call_operand.hbm [shape: f32[2,16,128], index: 8, kind: output, shape index: {}]  }
   0x1   :  { %14 = vsyncpa [#allocation7], 0 }
   0x2   :  { %15 = vsyncpa [#allocation10], 0 }
   0x3   :  { %16 = vsyncpa [#allocation5], 0  ;;  %s3153_s27 = smov [#allocation6]  }
   0x4   :  { %s34_s28 = sshll.u32 %s3153_s27, 4  ;;  %s35_s28 = int_to_ptr.vmem [resolvable:$true] %s34_s28 }
   0x5   :  { %s3053_s29 = scalar_lea.vmem %s35_s28, 4096  ;;  %p3058_p1 = scmp.lt.s32.totalorder %s35_s28, %s35_s28 }
   0x6   :  { %p3054_p0 = scmp.ne.s32.totalorder %s35_s28, %s3053_s29  ;;  %p3059_p2 = scmp.lt.s32.totalorder %s3053_s29, %s3053_s29 }
   0x8   :  { %p3060_p3 = por %p3059_p2, %p3058_p1 }
   0xa   :  { %p3061_p4 = pnand %p3060_p3, %p3054_p0 }
   0xc   :  { %3064 = shalt.err (!%p3061_p4)
}
   0xd   :  { %s3154_s30 = smov 256   ;;  %s3155_s9 = smov 16  }
   0xe   :  { %40 = dma.hbm_to_vmem [thread:$0]  %s3332_s1, 4096, %s35_s28, [#allocation7], %s3154_s30, %s3154_s30, %s3155_s9  }
   0xf   :  { %s3156_s12 = smov [#allocation3]  }
  0x10   :  { %s22_s13 = sshll.u32 %s3156_s12, 4  ;;  %s23_s13 = int_to_ptr.vmem [resolvable:$true] %s22_s13 }
  0x11   :  { %s3073_s14 = scalar_lea.vmem %s23_s13, 512  ;;  %p3078_p6 = scmp.lt.s32.totalorder %s23_s13, %s23_s13 }
  0x12   :  { %p3074_p5 = scmp.ne.s32.totalorder %s23_s13, %s3073_s14  ;;  %p3079_p7 = scmp.lt.s32.totalorder %s3073_s14, %s3073_s14 }
  0x14   :  { %p3080_p8 = por %p3079_p7, %p3078_p6 }
  0x16   :  { %p3081_p9 = pnand %p3080_p8, %p3074_p5 }
  0x18   :  { %3084 = shalt.err (!%p3081_p9)
}
  0x19   :  { %s3157_s15 = smov 128   ;;  %s3158_s16 = smov 8  }
  0x1a   :  { %28 = dma.hbm_to_vmem [thread:$0]  %s3331_s0, 512, %s23_s13, [#allocation4], %s3157_s15, %s3157_s15, %s3158_s16  }
  0x1b   :  { %s3159_s1 = smov [#allocation8]   ;;  %s3160_s20 = smov [#allocation9]  }
  0x1c   :  { %s48_s19 = sshll.u32 %s3159_s1, 4  ;;  %s64_s21 = sshll.u32 %s3160_s20, 4  ;;  %s49_s19 = int_to_ptr.vmem [resolvable:$true] %s48_s19  ;;  %s65_s21 = int_to_ptr.vmem [resolvable:$true] %s64_s21 }
  0x1d   :  { %s3093_s22 = scalar_lea.vmem %s49_s19, 30720  ;;  %p3098_p11 = scmp.lt.s32.totalorder %s49_s19, %s49_s19 }
  0x1e   :  { %p3094_p10 = scmp.ne.s32.totalorder %s49_s19, %s3093_s22  ;;  %p3099_p12 = scmp.lt.s32.totalorder %s3093_s22, %s3093_s22 }
  0x20   :  { %p3100_p13 = por %p3099_p12, %p3098_p11 }
  0x22   :  { %p3101_p0 = pnand %p3100_p13, %p3094_p10 }
  0x24   :  { %3104 = shalt.err (!%p3101_p0)
}
  0x25   :  { %54 = dma.hbm_to_vmem [thread:$0]  %s3334_s3, 30720, %s49_s19, [#allocation7], %s3157_s15, %s3157_s15, %s3158_s16  }
  0x26   :  { %s3113_s0 = scalar_lea.vmem %s65_s21, 2048  ;;  %p3118_p2 = scmp.lt.s32.totalorder %s65_s21, %s65_s21 }
  0x27   :  { %p3114_p1 = scmp.ne.s32.totalorder %s65_s21, %s3113_s0  ;;  %p3119_p3 = scmp.lt.s32.totalorder %s3113_s0, %s3113_s0 }
  0x29   :  { %p3120_p4 = por %p3119_p3, %p3118_p2 }
  0x2b   :  { %p3121_p5 = pnand %p3120_p4, %p3114_p1 }
  0x2d   :  { %3124 = shalt.err (!%p3121_p5)
}
  0x2e   :  { %70 = dma.hbm_to_vmem [thread:$0]  %s3337_s6, 2048, %s65_s21, [#allocation10], %s3157_s15, %s3157_s15, %s3158_s16  }
  0x2f   :  { %3145 = dma.done.wait [#allocation4], 512  }
  0x30   :  { %3146 = vsyncadd [#allocation4], 4294966784 }
  0x31   :  { %3147 = dma.done.wait [#allocation7], 34816  }
  0x32   :  { %3148 = vsyncadd [#allocation7], 4294932480 }
  0x33   :  { %3149 = dma.done.wait [#allocation10], 2048  }
  0x34   :  { %3150 = vsyncadd [#allocation10], 4294965248  ;;  %v3161_v0 = vmov 0.0   ;;  %v120_v1 = vld [vmem:[#allocation6 + $0xf8] sm:$0xff]  ;;  %v119_v2 = vld [vmem:[#allocation6 + $0xf0] sm:$0xff]  ;;  %s3162_s30 = smov [#allocation11]  }
  0x35   :  { %197 = vmatprep.mubr.f32.mxu0 %v3161_v0  ;;  %250 = vst [vmem:[#allocation2] sm:$0xff] %v3161_v0  ;;  %251 = vst [vmem:[#allocation2 + $0x20] sm:$0xff] %v3161_v0  ;;  %v118_v3 = vld [vmem:[#allocation6 + $0xe8] sm:$0xff]  ;;  %133 = vmatprep.subr.mxu0 %v120_v1  ;;  %v117_v4 = vld [vmem:[#allocation6 + $0xe0] sm:$0xff]  ;;  %s2038_s9 = sshll.u32 %s3162_s30, 4  ;;  %s2039_s9 = int_to_ptr.vmem [resolvable:$true] %s2038_s9 }
  0x36   :  { %252 = vst [vmem:[#allocation2 + $0x18] sm:$0xff] %v3161_v0  ;;  %253 = vst [vmem:[#allocation2 + $0x38] sm:$0xff] %v3161_v0  ;;  %134 = vmatpush1.msra.mxu0 %v119_v2  ;;  %v116_v5 = vld [vmem:[#allocation6 + $0xd8] sm:$0xff]  ;;  %v115_v6 = vld [vmem:[#allocation6 + $0xd0] sm:$0xff]  ;;  %s3125_s10 = scalar_lea.vmem %s2039_s9, 512  ;;  %p3130_p7 = scmp.lt.s32.totalorder %s2039_s9, %s2039_s9 }
  0x37   :  { %135 = vmatprep.subr.mxu0 %v118_v3  ;;  %v114_v7 = vld [vmem:[#allocation6 + $0xc8] sm:$0xff]  ;;  %v113_v8 = vld [vmem:[#allocation6 + $0xc0] sm:$0xff]  ;;  %v112_v9 = vld [vmem:[#allocation6 + $0xb8] sm:$0xff]  ;;  %p3126_p6 = scmp.ne.s32.totalorder %s2039_s9, %s3125_s10  ;;  %p3131_p8 = scmp.lt.s32.totalorder %s3125_s10, %s3125_s10 }
  0x38   :  { %136 = vmatpush1.msra.mxu0 %v117_v4  ;;  %v111_v10 = vld [vmem:[#allocation6 + $0xb0] sm:$0xff]  ;;  %v110_v11 = vld [vmem:[#allocation6 + $0xa8] sm:$0xff]  ;;  %v109_v12 = vld [vmem:[#allocation6 + $0xa0] sm:$0xff] }
  0x39   :  { %137 = vmatprep.subr.mxu0 %v116_v5  ;;  %v108_v13 = vld [vmem:[#allocation6 + $0x98] sm:$0xff]  ;;  %v107_v14 = vld [vmem:[#allocation6 + $0x90] sm:$0xff]  ;;  %v106_v15 = vld [vmem:[#allocation6 + $0x88] sm:$0xff]  ;;  %p3132_p9 = por %p3131_p8, %p3130_p7 }
  0x3a   :  { %138 = vmatpush1.msra.mxu0 %v115_v6  ;;  %v105_v16 = vld [vmem:[#allocation6 + $0x80] sm:$0xff]  ;;  %v104_v17 = vld [vmem:[#allocation6 + $0x78] sm:$0xff]  ;;  %v103_v18 = vld [vmem:[#allocation6 + $0x70] sm:$0xff] }
  0x3b   :  { %139 = vmatprep.subr.mxu0 %v114_v7  ;;  %v102_v19 = vld [vmem:[#allocation6 + $0x68] sm:$0xff]  ;;  %v101_v20 = vld [vmem:[#allocation6 + $0x60] sm:$0xff]  ;;  %v100_v21 = vld [vmem:[#allocation6 + $0x58] sm:$0xff]  ;;  %v123_v7 = vlaneseq  ;;  %p3133_p10 = pnand %p3132_p9, %p3126_p6 }
  0x3c   :  { %140 = vmatpush1.msra.mxu0 %v113_v8  ;;  %v99_v22 = vld [vmem:[#allocation6 + $0x50] sm:$0xff]  ;;  %v98_v23 = vld [vmem:[#allocation6 + $0x48] sm:$0xff]  ;;  %v97_v24 = vld [vmem:[#allocation6 + $0x40] sm:$0xff] }
  0x3d   :  { %141 = vmatprep.subr.mxu0 %v112_v9  ;;  %v96_v25 = vld [vmem:[#allocation6 + $0x38] sm:$0xff]  ;;  %v95_v26 = vld [vmem:[#allocation6 + $0x30] sm:$0xff]  ;;  %v94_v27 = vld [vmem:[#allocation6 + $0x28] sm:$0xff]  ;;  %v124_v8 = vshrl.u32 %v123_v7, 7 }
  0x3e   :  { %142 = vmatpush1.msra.mxu0 %v111_v10  ;;  %v93_v28 = vld [vmem:[#allocation6 + $0x20] sm:$0xff]  ;;  %v92_v29 = vld [vmem:[#allocation6 + $0x18] sm:$0xff]  ;;  %v91_v30 = vld [vmem:[#allocation6 + $0x10] sm:$0xff] }
  0x3f   :  { %143 = vmatprep.subr.mxu0 %v110_v11  ;;  %v90_v31 = vld [vmem:[#allocation6 + $0x8] sm:$0xff]  ;;  %v89_v32 = vld [vmem:[#allocation6] sm:$0xff]  ;;  %v87_v35 = vld [vmem:[#allocation3 + $0x10] sm:$0xff]  ;;  %v129_v9 = vsub.s32 1, %v124_v8 }
  0x40   :  { %144 = vmatpush1.msra.mxu0 %v109_v12  ;;  %v85_v33 = vld [vmem:[#allocation3] sm:$0xff]  ;;  %v86_v34 = vld [vmem:[#allocation3 + $0x8] sm:$0xff]  ;;  %v88_v36 = vld [vmem:[#allocation3 + $0x18] sm:$0xff] }
  0x41   :  { %145 = vmatprep.subr.mxu0 %v108_v13  ;;  %v319_v37 = vld [vmem:[#allocation8 + $0x178] sm:$0xff]  ;;  %v318_v39 = vld [vmem:[#allocation8 + $0x170] sm:$0xff]  ;;  %v317_v41 = vld [vmem:[#allocation8 + $0x168] sm:$0xff] }
  0x42   :  { %146 = vmatpush1.msra.mxu0 %v107_v14  ;;  %v277_v38 = vld [vmem:[#allocation8 + $0x78] sm:$0xff]  ;;  %2379 = vmatprep.subr.mxu1 %v319_v37  ;;  %v276_v40 = vld [vmem:[#allocation8 + $0x70] sm:$0xff]  ;;  %v275_v42 = vld [vmem:[#allocation8 + $0x68] sm:$0xff] }
  0x43   :  { %147 = vmatprep.subr.mxu0 %v106_v15  ;;  %2380 = vmatpush3.msra.mxu1 %v319_v37  ;;  %v316_v43 = vld [vmem:[#allocation8 + $0x160] sm:$0xff]  ;;  %v315_v45 = vld [vmem:[#allocation8 + $0x158] sm:$0xff]  ;;  %v314_v47 = vld [vmem:[#allocation8 + $0x150] sm:$0xff] }
  0x44   :  { %148 = vmatpush1.msra.mxu0 %v105_v16  ;;  %2381 = vmatprep.subr.mxu1 %v318_v39  ;;  %v274_v44 = vld [vmem:[#allocation8 + $0x60] sm:$0xff]  ;;  %v273_v46 = vld [vmem:[#allocation8 + $0x58] sm:$0xff]  ;;  %v272_v48 = vld [vmem:[#allocation8 + $0x50] sm:$0xff] }
  0x45   :  { %149 = vmatprep.subr.mxu0 %v104_v17  ;;  %2382 = vmatpush3.msra.mxu1 %v318_v39  ;;  %v313_v49 = vld [vmem:[#allocation8 + $0x148] sm:$0xff]  ;;  %v312_v51 = vld [vmem:[#allocation8 + $0x140] sm:$0xff]  ;;  %v311_v53 = vld [vmem:[#allocation8 + $0x138] sm:$0xff] }
  0x46   :  { %150 = vmatpush1.msra.mxu0 %v103_v18  ;;  %2383 = vmatprep.subr.mxu1 %v317_v41  ;;  %v271_v50 = vld [vmem:[#allocation8 + $0x48] sm:$0xff]  ;;  %v270_v52 = vld [vmem:[#allocation8 + $0x40] sm:$0xff]  ;;  %v269_v54 = vld [vmem:[#allocation8 + $0x38] sm:$0xff] }
  0x47   :  { %151 = vmatprep.subr.mxu0 %v102_v19  ;;  %2384 = vmatpush3.msra.mxu1 %v317_v41  ;;  %v310_v55 = vld [vmem:[#allocation8 + $0x130] sm:$0xff]  ;;  %v309_v57 = vld [vmem:[#allocation8 + $0x128] sm:$0xff]  ;;  %v308_v59 = vld [vmem:[#allocation8 + $0x120] sm:$0xff] }
  0x48   :  { %152 = vmatpush1.msra.mxu0 %v101_v20  ;;  %2385 = vmatprep.subr.mxu1 %v316_v43  ;;  %v268_v56 = vld [vmem:[#allocation8 + $0x30] sm:$0xff]  ;;  %v267_v58 = vld [vmem:[#allocation8 + $0x28] sm:$0xff]  ;;  %v266_v60 = vld [vmem:[#allocation8 + $0x20] sm:$0xff] }
  0x49   :  { %153 = vmatprep.subr.mxu0 %v100_v21  ;;  %2386 = vmatpush3.msra.mxu1 %v316_v43  ;;  %v307_v61 = vld [vmem:[#allocation8 + $0x118] sm:$0xff]  ;;  %v306_v63 = vld [vmem:[#allocation8 + $0x110] sm:$0xff]  ;;  %v305_v1 = vld [vmem:[#allocation8 + $0x108] sm:$0xff] }
  0x4a   :  { %154 = vmatpush1.msra.mxu0 %v99_v22  ;;  %2387 = vmatprep.subr.mxu1 %v315_v45  ;;  %v265_v62 = vld [vmem:[#allocation8 + $0x18] sm:$0xff]  ;;  %v263_v2 = vld [vmem:[#allocation8 + $0x8] sm:$0xff]  ;;  %v304_v3 = vld [vmem:[#allocation8 + $0x100] sm:$0xff] }
  0x4b   :  { %155 = vmatprep.subr.mxu0 %v98_v23  ;;  %2388 = vmatpush3.msra.mxu1 %v315_v45  ;;  %v262_v4 = vld [vmem:[#allocation8] sm:$0xff]  ;;  %v3237_v5 = vld [vmem:[#allocation8 + $0x1f8] sm:$0xff]  ;;  %v292_v7 = vld [vmem:[#allocation8 + $0xc8] sm:$0xff] }
  0x4c   :  { %156 = vmatpush1.msra.mxu0 %v97_v24  ;;  %2389 = vmatprep.subr.mxu1 %v314_v47  ;;  %v3239_v6 = vld [vmem:[#allocation8 + $0xf8] sm:$0xff]  ;;  %v121_v10 = vld [vmem:[%s3333_s2] sm:$0x3] }
  0x4d   :  { %157 = vmatprep.subr.mxu0 %v96_v25  ;;  %2390 = vmatpush3.msra.mxu1 %v314_v47  ;;  %v130_v11 = vrot.slane %v121_v10, %v129_v9  ;;  %v291_v9 = vld [vmem:[#allocation8 + $0xc0] sm:$0xff] }
  0x4e   :  { %158 = vmatpush1.msra.mxu0 %v95_v26  ;;  %2391 = vmatprep.subr.mxu1 %v313_v49 }
  0x4f   :  { %159 = vmatprep.subr.mxu0 %v94_v27  ;;  %2392 = vmatpush3.msra.mxu1 %v313_v49 }
  0x50   :  { %160 = vmatpush1.msra.mxu0 %v93_v28  ;;  %2393 = vmatprep.subr.mxu1 %v312_v51 }
  0x51   :  { %161 = vmatprep.subr.mxu0 %v92_v29  ;;  %2394 = vmatpush3.msra.mxu1 %v312_v51 }
  0x52   :  { %162 = vmatpush1.msra.mxu0 %v91_v30  ;;  %2395 = vmatprep.subr.mxu1 %v311_v53 }
  0x53   :  { %163 = vmatprep.subr.mxu0 %v90_v31  ;;  %2396 = vmatpush3.msra.mxu1 %v311_v53 }
  0x54   :  { %164 = vmatpush1.msra.mxu0 %v89_v32  ;;  %2397 = vmatprep.subr.mxu1 %v310_v55  ;;  %v125_v32 = vsub.s32 0, %v124_v8  ;;  %v503_v8 = vld [vmem:[#allocation8 + $0x1c0] sm:$0xff] }
  0x55   :  { %198 = vmatmul.mubr.f32.vlgmr.msra.gmra.mxu0 %v85_v33  ;;  %2417 = vmatprep.subr.mxu0 %v277_v38 }
  0x56   :  { %203 = vmatprep.mubr.f32.mxu0 %v3161_v0  ;;  %2418 = vmatpush3.msra.mxu0 %v277_v38 }
  0x57   :  { %2419 = vmatprep.subr.mxu0 %v276_v40  ;;  %2398 = vmatpush3.msra.mxu1 %v310_v55  ;;  %v297_v55 = vld [vmem:[#allocation8 + $0xf0] sm:$0xff] }
  0x58   :  { %2420 = vmatpush3.msra.mxu0 %v276_v40  ;;  %2399 = vmatprep.subr.mxu1 %v309_v57 }
  0x59   :  { %204 = vmatmul.mubr.f32.gmra.mxu0 %v86_v34  ;;  %2421 = vmatprep.subr.mxu0 %v275_v42 }
  0x5a   :  { %209 = vmatprep.mubr.f32.mxu0 %v3161_v0  ;;  %2422 = vmatpush3.msra.mxu0 %v275_v42 }
  0x5b   :  { %2423 = vmatprep.subr.mxu0 %v274_v44  ;;  %2400 = vmatpush3.msra.mxu1 %v309_v57  ;;  %v296_v57 = vld [vmem:[#allocation8 + $0xe8] sm:$0xff] }
  0x5c   :  { %2424 = vmatpush3.msra.mxu0 %v274_v44  ;;  %2401 = vmatprep.subr.mxu1 %v308_v59 }
  0x5d   :  { %210 = vmatmul.mubr.f32.gmra.mxu0 %v87_v35  ;;  %2425 = vmatprep.subr.mxu0 %v273_v46  ;;  %v126_v35 = vrot.slane %v121_v10, %v125_v32  ;;  %v502_v10 = vld [vmem:[#allocation8 + $0x1b8] sm:$0xff] }
  0x5e   :  { %215 = vmatprep.mubr.f32.mxu0 %v3161_v0  ;;  %2426 = vmatpush3.msra.mxu0 %v273_v46  ;;  %v264_v0 = vld [vmem:[#allocation8 + $0x10] sm:$0xff] }
  0x5f   :  { %2427 = vmatprep.subr.mxu0 %v272_v48  ;;  %2402 = vmatpush3.msra.mxu1 %v308_v59 }
  0x60   :  { %2428 = vmatpush3.msra.mxu0 %v272_v48  ;;  %2403 = vmatprep.subr.mxu1 %v307_v61 }
  0x61   :  { %216 = vmatmul.mubr.f32.gmra.mxu0 %v88_v36  ;;  %2429 = vmatprep.subr.mxu0 %v271_v50 }
  0x62   :  { %2430 = vmatpush3.msra.mxu0 %v271_v50  ;;  %2404 = vmatpush3.msra.mxu1 %v307_v61  ;;  %v295_v61 = vld [vmem:[#allocation8 + $0xe0] sm:$0xff] }
  0x63   :  { %2431 = vmatprep.subr.mxu0 %v270_v52  ;;  %2405 = vmatprep.subr.mxu1 %v306_v63 }
  0x64   :  { %2432 = vmatpush3.msra.mxu0 %v270_v52  ;;  %2406 = vmatpush3.msra.mxu1 %v306_v63  ;;  %v509_v52 = vld [vmem:[#allocation8 + $0x1f0] sm:$0xff]  ;;  %v294_v63 = vld [vmem:[#allocation8 + $0xd8] sm:$0xff] }
  0x65   :  { %2433 = vmatprep.subr.mxu0 %v269_v54  ;;  %2407 = vmatprep.subr.mxu1 %v305_v1 }
  0x66   :  { %2434 = vmatpush3.msra.mxu0 %v269_v54  ;;  %2408 = vmatpush3.msra.mxu1 %v305_v1 }
  0x67   :  { %2435 = vmatprep.subr.mxu0 %v268_v56  ;;  %2409 = vmatprep.subr.mxu1 %v304_v3 }
  0x68   :  { %2436 = vmatpush3.msra.mxu0 %v268_v56  ;;  %2410 = vmatpush3.msra.mxu1 %v304_v3  ;;  %v508_v56 = vld [vmem:[#allocation8 + $0x1e8] sm:$0xff]  ;;  %v293_v3 = vld [vmem:[#allocation8 + $0xd0] sm:$0xff] }
  0x69   :  { %2437 = vmatprep.subr.mxu0 %v267_v58  ;;  %2455 = vmatprep.subr.mxu1 %v3237_v5 }
  0x6a   :  { %2438 = vmatpush3.msra.mxu0 %v267_v58 }
  0x6b   :  { %2439 = vmatprep.subr.mxu0 %v266_v60 }
  0x6c   :  { %2440 = vmatpush3.msra.mxu0 %v266_v60  ;;  %v507_v60 = vld [vmem:[#allocation8 + $0x1e0] sm:$0xff] }
  0x6d   :  { %2441 = vmatprep.subr.mxu0 %v265_v62 }
  0x6e   :  { %2442 = vmatpush3.msra.mxu0 %v265_v62  ;;  %v506_v62 = vld [vmem:[#allocation8 + $0x1d8] sm:$0xff] }
  0x6f   :  { %2443 = vmatprep.subr.mxu0 %v264_v0 }
  0x70   :  { %2444 = vmatpush3.msra.mxu0 %v264_v0 }
  0x71   :  { %2445 = vmatprep.subr.mxu0 %v263_v2 }
  0x72   :  { %2446 = vmatpush3.msra.mxu0 %v263_v2  ;;  %v505_v2 = vld [vmem:[#allocation8 + $0x1d0] sm:$0xff] }
  0x73   :  { %2447 = vmatprep.subr.mxu0 %v262_v4 }
  0x74   :  { %2448 = vmatpush3.msra.mxu0 %v262_v4 }
  0x75   :  { %2493 = vmatprep.subr.mxu0 %v3239_v6 }
 0x115   :  { %v199_v12 = vpop.f32.mrf.mxu0 }
 0x116   :  { %v200_v38 = vadd.f32 %v199_v12, %v126_v35  ;;  %v501_v12 = vld [vmem:[#allocation8 + $0x1b0] sm:$0xff] }
 0x117   :  { %v201_v13 = vpop.f32.mrf.mxu0 }
 0x118   :  { %v202_v14 = vadd.f32 %v201_v13, %v130_v11  ;;  %v289_v13 = vld [vmem:[#allocation8 + $0xb0] sm:$0xff] }
 0x119   :  { %v205_v15 = vpop.f32.mrf.mxu0 }
 0x11a   :  { %v2052_v16 = vmul.f32 -1.442695, %v202_v14  ;;  %v206_v41 = vadd.f32 %v205_v15, %v126_v35  ;;  %v500_v14 = vld [vmem:[#allocation8 + $0x1a8] sm:$0xff] }
 0x11b   :  { %v207_v17 = vpop.f32.mrf.mxu0  ;;  %v288_v15 = vld [vmem:[#allocation8 + $0xa8] sm:$0xff] }
 0x11c   :  { %3029 = vpow2.f32 %v2052_v16  ;;  %v208_v18 = vadd.f32 %v207_v17, %v130_v11  ;;  %v499_v16 = vld [vmem:[#allocation8 + $0x1a0] sm:$0xff] }
 0x11d   :  { %v211_v19 = vpop.f32.mrf.mxu0  ;;  %v287_v17 = vld [vmem:[#allocation8 + $0xa0] sm:$0xff] }
 0x11e   :  { %v2053_v20 = vmul.f32 -1.442695, %v208_v18  ;;  %v212_v44 = vadd.f32 %v211_v19, %v126_v35  ;;  %v498_v18 = vld [vmem:[#allocation8 + $0x198] sm:$0xff] }
 0x11f   :  { %v213_v21 = vpop.f32.mrf.mxu0  ;;  %v286_v19 = vld [vmem:[#allocation8 + $0x98] sm:$0xff] }
 0x120   :  { %3031 = vpow2.f32 %v2053_v20  ;;  %v214_v22 = vadd.f32 %v213_v21, %v130_v11  ;;  %v497_v20 = vld [vmem:[#allocation8 + $0x190] sm:$0xff] }
 0x121   :  { %v217_v23 = vpop.f32.mrf.mxu0  ;;  %v285_v21 = vld [vmem:[#allocation8 + $0x90] sm:$0xff] }
 0x122   :  { %v2054_v24 = vmul.f32 -1.442695, %v214_v22  ;;  %v218_v49 = vadd.f32 %v217_v23, %v126_v35  ;;  %v496_v22 = vld [vmem:[#allocation8 + $0x188] sm:$0xff] }
 0x123   :  { %v219_v25 = vpop.f32.mrf.mxu0  ;;  %v284_v23 = vld [vmem:[#allocation8 + $0x88] sm:$0xff] }
 0x124   :  { %3033 = vpow2.f32 %v2054_v24  ;;  %v220_v26 = vadd.f32 %v219_v25, %v130_v11  ;;  %v290_v11 = vld [vmem:[#allocation8 + $0xb8] sm:$0xff]  ;;  %v495_v24 = vld [vmem:[#allocation8 + $0x180] sm:$0xff]  ;;  %v809_v35 = vld [vmem:[#allocation8 + $0x2e8] sm:$0xff] }
 0x125   :  { %v283_v25 = vld [vmem:[#allocation8 + $0x80] sm:$0xff] }
 0x126   :  { %v2055_v27 = vmul.f32 -1.442695, %v220_v26  ;;  %v701_v26 = vld [vmem:[#allocation8 + $0x278] sm:$0xff] }
 0x128   :  { %3035 = vpow2.f32 %v2055_v27  ;;  %v811_v27 = vld [vmem:[#allocation8 + $0x2f8] sm:$0xff] }
 0x129   :  { %v3030_v28 = vpop.eup %3029 }
 0x12a   :  { %v234_v29 = vadd.f32 1.0, %v3030_v28 }
 0x12c   :  { %3037 = vrcp.f32 %v234_v29 }
 0x12d   :  { %v3032_v30 = vpop.eup %3031 }
 0x12e   :  { %v235_v31 = vadd.f32 1.0, %v3032_v30  ;;  %v700_v30 = vld [vmem:[#allocation8 + $0x270] sm:$0xff] }
 0x130   :  { %3039 = vrcp.f32 %v235_v31 }
 0x131   :  { %v3034_v33 = vpop.eup %3033 }
 0x132   :  { %v236_v34 = vadd.f32 1.0, %v3034_v33  ;;  %v810_v33 = vld [vmem:[#allocation8 + $0x2f0] sm:$0xff] }
 0x134   :  { %3041 = vrcp.f32 %v236_v34  ;;  %v699_v34 = vld [vmem:[#allocation8 + $0x268] sm:$0xff] }
 0x135   :  { %v3036_v36 = vpop.eup %3035 }
 0x136   :  { %v237_v37 = vadd.f32 1.0, %v3036_v36 }
 0x138   :  { %3043 = vrcp.f32 %v237_v37 }
 0x139   :  { %v3038_v39 = vpop.eup %3037 }
 0x13a   :  { %v3246_v40 = vmul.f32 %v3038_v39, %v200_v38  ;;  %v698_v39 = vld [vmem:[#allocation8 + $0x260] sm:$0xff] }
 0x13c   :  { %254 = vst [vmem:[#allocation2 + $0x8] sm:$0xff] %v3246_v40 }
 0x13d   :  { %v3040_v42 = vpop.eup %3039 }
 0x13e   :  { %v3249_v43 = vmul.f32 %v3040_v42, %v206_v41  ;;  %v808_v41 = vld [vmem:[#allocation8 + $0x2e0] sm:$0xff] }
 0x140   :  { %255 = vst [vmem:[#allocation2 + $0x10] sm:$0xff] %v3249_v43 }
 0x141   :  { %v3042_v45 = vpop.eup %3041 }
 0x142   :  { %v3252_v46 = vmul.f32 %v3042_v45, %v212_v44  ;;  %v697_v44 = vld [vmem:[#allocation8 + $0x258] sm:$0xff] }
 0x143   :  { %v299_v47 = vld [vmem:[#allocation2 + $0x3] sm:$0xff]  ;;  %v807_v45 = vld [vmem:[#allocation8 + $0x2d8] sm:$0xff] }
 0x144   :  { %v258_v48 = vld [vmem:[#allocation2 + $0x1] sm:$0xff]  ;;  %256 = vst [vmem:[#allocation2 + $0x28] sm:$0xff] %v3252_v46  ;;  %2411 = vmatprep.mubr.f32.mxu1 %v299_v47  ;;  %v696_v47 = vld [vmem:[#allocation8 + $0x250] sm:$0xff] }
 0x145   :  { %2449 = vmatprep.mubr.f32.mxu0 %v258_v48  ;;  %v3044_v50 = vpop.eup %3043  ;;  %v490_v4 = vld [vmem:[#allocation2 + $0x4] sm:$0xff]  ;;  %v806_v48 = vld [vmem:[#allocation8 + $0x2d0] sm:$0xff] }
 0x146   :  { %v3255_v51 = vmul.f32 %v3044_v50, %v218_v49  ;;  %v681_v38 = vld [vmem:[#allocation2 + $0x5] sm:$0xff] }
 0x147   :  { %v3257_v53 = vld [vmem:[#allocation2 + $0xb] sm:$0xff] }
 0x148   :  { %v3259_v54 = vld [vmem:[#allocation2 + $0x9] sm:$0xff]  ;;  %257 = vst [vmem:[#allocation2 + $0x30] sm:$0xff] %v3255_v51  ;;  %2412 = vmatmul.mubr.f32.vlgmr.msra.gmra.mxu1 %v3257_v53 }
 0x149   :  { %2450 = vmatmul.mubr.f32.vlgmr.msra.gmra.mxu0 %v3259_v54  ;;  %2456 = vmatpush3.msra.mxu1 %v3237_v5  ;;  %v278_v5 = vld [vmem:[#allocation2 + $0x2] sm:$0xff]  ;;  %v3269_v28 = vld [vmem:[#allocation2 + $0xc] sm:$0xff] }
 0x14a   :  { %2494 = vmatpush3.msra.mxu0 %v3239_v6  ;;  %2457 = vmatprep.subr.mxu1 %v509_v52  ;;  %v504_v6 = vld [vmem:[#allocation8 + $0x1c8] sm:$0xff] }
 0x14b   :  { %2495 = vmatprep.subr.mxu0 %v297_v55  ;;  %2458 = vmatpush3.msra.mxu1 %v509_v52  ;;  %v301_v58 = vld [vmem:[#allocation2 + $0x23] sm:$0xff] }
 0x14c   :  { %2496 = vmatpush3.msra.mxu0 %v297_v55  ;;  %v260_v59 = vld [vmem:[#allocation2 + $0x21] sm:$0xff]  ;;  %2459 = vmatprep.subr.mxu1 %v508_v56  ;;  %v3271_v29 = vld [vmem:[#allocation2 + $0xa] sm:$0xff] }
 0x14d   :  { %2497 = vmatprep.subr.mxu0 %v296_v57  ;;  %2414 = vmatprep.mubr.f32.mxu1 %v301_v58  ;;  %v492_v31 = vld [vmem:[#allocation2 + $0x24] sm:$0xff]  ;;  %v692_v58 = vld [vmem:[#allocation8 + $0x230] sm:$0xff] }
 0x14e   :  { %2452 = vmatprep.mubr.f32.mxu0 %v260_v59  ;;  %2460 = vmatpush3.msra.mxu1 %v508_v56  ;;  %v280_v32 = vld [vmem:[#allocation2 + $0x22] sm:$0xff]  ;;  %v693_v56 = vld [vmem:[#allocation8 + $0x238] sm:$0xff]  ;;  %v802_v59 = vld [vmem:[#allocation8 + $0x2b0] sm:$0xff] }
 0x14f   :  { %2498 = vmatpush3.msra.mxu0 %v296_v57  ;;  %2461 = vmatprep.subr.mxu1 %v507_v60  ;;  %v302_v0 = vld [vmem:[#allocation2 + $0x2b] sm:$0xff]  ;;  %v694_v52 = vld [vmem:[#allocation8 + $0x240] sm:$0xff]  ;;  %v803_v57 = vld [vmem:[#allocation8 + $0x2b8] sm:$0xff] }
 0x150   :  { %2499 = vmatprep.subr.mxu0 %v295_v61  ;;  %v3266_v1 = vld [vmem:[#allocation2 + $0x29] sm:$0xff]  ;;  %2462 = vmatpush3.msra.mxu1 %v507_v60  ;;  %v804_v55 = vld [vmem:[#allocation8 + $0x2c0] sm:$0xff] }
 0x151   :  { %2500 = vmatpush3.msra.mxu0 %v295_v61  ;;  %2463 = vmatprep.subr.mxu1 %v506_v62  ;;  %v3275_v36 = vld [vmem:[#allocation2 + $0x2c] sm:$0xff] }
 0x152   :  { %2501 = vmatprep.subr.mxu0 %v294_v63  ;;  %2415 = vmatmul.mubr.f32.gmra.mxu1 %v302_v0  ;;  %v3277_v37 = vld [vmem:[#allocation2 + $0x2a] sm:$0xff]  ;;  %v689_v0 = vld [vmem:[#allocation8 + $0x218] sm:$0xff] }
 0x153   :  { %2453 = vmatmul.mubr.f32.gmra.mxu0 %v3266_v1  ;;  %2464 = vmatpush3.msra.mxu1 %v506_v62  ;;  %v791_v42 = vld [vmem:[#allocation2 + $0x6] sm:$0xff] }
 0x154   :  { %2502 = vmatpush3.msra.mxu0 %v294_v63  ;;  %2465 = vmatprep.subr.mxu1 %v505_v2  ;;  %v695_v49 = vld [vmem:[#allocation8 + $0x248] sm:$0xff]  ;;  %v690_v62 = vld [vmem:[#allocation8 + $0x220] sm:$0xff] }
 0x155   :  { %2487 = vmatprep.mubr.f32.mxu1 %v490_v4  ;;  %2503 = vmatprep.subr.mxu0 %v293_v3  ;;  %v805_v50 = vld [vmem:[#allocation8 + $0x2c8] sm:$0xff]  ;;  %v800_v63 = vld [vmem:[#allocation8 + $0x2a0] sm:$0xff]  ;;  %v798_v4 = vld [vmem:[#allocation8 + $0x290] sm:$0xff] }
 0x156   :  { %2525 = vmatprep.mubr.f32.mxu0 %v278_v5  ;;  %2466 = vmatpush3.msra.mxu1 %v505_v2  ;;  %v691_v60 = vld [vmem:[#allocation8 + $0x228] sm:$0xff]  ;;  %v799_v2 = vld [vmem:[#allocation8 + $0x298] sm:$0xff] }
 0x157   :  { %2504 = vmatpush3.msra.mxu0 %v293_v3  ;;  %2467 = vmatprep.subr.mxu1 %v504_v6  ;;  %v801_v61 = vld [vmem:[#allocation8 + $0x2a8] sm:$0xff]  ;;  %v688_v3 = vld [vmem:[#allocation8 + $0x210] sm:$0xff] }
 0x158   :  { %2505 = vmatprep.subr.mxu0 %v292_v7  ;;  %2468 = vmatpush3.msra.mxu1 %v504_v6  ;;  %v687_v5 = vld [vmem:[#allocation8 + $0x208] sm:$0xff] }
 0x159   :  { %2506 = vmatpush3.msra.mxu0 %v292_v7  ;;  %2469 = vmatprep.subr.mxu1 %v503_v8  ;;  %v797_v6 = vld [vmem:[#allocation8 + $0x288] sm:$0xff]  ;;  %v686_v7 = vld [vmem:[#allocation8 + $0x200] sm:$0xff] }
 0x15a   :  { %2507 = vmatprep.subr.mxu0 %v291_v9  ;;  %2470 = vmatpush3.msra.mxu1 %v503_v8  ;;  %v796_v8 = vld [vmem:[#allocation8 + $0x280] sm:$0xff] }
 0x15b   :  { %2508 = vmatpush3.msra.mxu0 %v291_v9  ;;  %2471 = vmatprep.subr.mxu1 %v502_v10  ;;  %v921_v9 = vld [vmem:[#allocation8 + $0x378] sm:$0xff] }
 0x15c   :  { %2509 = vmatprep.subr.mxu0 %v290_v11  ;;  %2472 = vmatpush3.msra.mxu1 %v502_v10  ;;  %v1031_v10 = vld [vmem:[#allocation8 + $0x3f8] sm:$0xff] }
 0x15d   :  { %2510 = vmatpush3.msra.mxu0 %v290_v11  ;;  %2473 = vmatprep.subr.mxu1 %v501_v12  ;;  %v3281_v11 = vld [vmem:[#allocation2 + $0xd] sm:$0xff] }
 0x15e   :  { %2511 = vmatprep.subr.mxu0 %v289_v13  ;;  %2474 = vmatpush3.msra.mxu1 %v501_v12  ;;  %v3283_v12 = vld [vmem:[#allocation2 + $0xe] sm:$0xff] }
 0x15f   :  { %2512 = vmatpush3.msra.mxu0 %v289_v13  ;;  %2475 = vmatprep.subr.mxu1 %v500_v14  ;;  %v920_v13 = vld [vmem:[#allocation8 + $0x370] sm:$0xff] }
 0x160   :  { %2513 = vmatprep.subr.mxu0 %v288_v15  ;;  %2476 = vmatpush3.msra.mxu1 %v500_v14  ;;  %v683_v14 = vld [vmem:[#allocation2 + $0x25] sm:$0xff] }
 0x161   :  { %2514 = vmatpush3.msra.mxu0 %v288_v15  ;;  %2477 = vmatprep.subr.mxu1 %v499_v16  ;;  %v793_v15 = vld [vmem:[#allocation2 + $0x26] sm:$0xff] }
 0x162   :  { %2515 = vmatprep.subr.mxu0 %v287_v17  ;;  %2478 = vmatpush3.msra.mxu1 %v499_v16  ;;  %v1030_v16 = vld [vmem:[#allocation8 + $0x3f0] sm:$0xff] }
 0x163   :  { %2516 = vmatpush3.msra.mxu0 %v287_v17  ;;  %2479 = vmatprep.subr.mxu1 %v498_v18  ;;  %v919_v17 = vld [vmem:[#allocation8 + $0x368] sm:$0xff] }
 0x164   :  { %2517 = vmatprep.subr.mxu0 %v286_v19  ;;  %2480 = vmatpush3.msra.mxu1 %v498_v18  ;;  %v1029_v18 = vld [vmem:[#allocation8 + $0x3e8] sm:$0xff] }
 0x165   :  { %2518 = vmatpush3.msra.mxu0 %v286_v19  ;;  %2481 = vmatprep.subr.mxu1 %v497_v20  ;;  %v3287_v19 = vld [vmem:[#allocation2 + $0x2d] sm:$0xff] }
 0x166   :  { %2519 = vmatprep.subr.mxu0 %v285_v21  ;;  %2482 = vmatpush3.msra.mxu1 %v497_v20  ;;  %v3289_v20 = vld [vmem:[#allocation2 + $0x2e] sm:$0xff] }
 0x167   :  { %2520 = vmatpush3.msra.mxu0 %v285_v21  ;;  %2483 = vmatprep.subr.mxu1 %v496_v22  ;;  %v901_v21 = vld [vmem:[#allocation2 + $0x7] sm:$0xff] }
 0x168   :  { %2521 = vmatprep.subr.mxu0 %v284_v23  ;;  %2484 = vmatpush3.msra.mxu1 %v496_v22  ;;  %v918_v22 = vld [vmem:[#allocation8 + $0x360] sm:$0xff] }
 0x169   :  { %2522 = vmatpush3.msra.mxu0 %v284_v23  ;;  %2485 = vmatprep.subr.mxu1 %v495_v24  ;;  %v1028_v23 = vld [vmem:[#allocation8 + $0x3e0] sm:$0xff] }
 0x16a   :  { %2523 = vmatprep.subr.mxu0 %v283_v25  ;;  %2486 = vmatpush3.msra.mxu1 %v495_v24  ;;  %v917_v24 = vld [vmem:[#allocation8 + $0x358] sm:$0xff] }
 0x16b   :  { %2524 = vmatpush3.msra.mxu0 %v283_v25  ;;  %2488 = vmatmul.mubr.f32.vlgmr.msra.gmra.mxu1 %v3269_v28  ;;  %v1027_v25 = vld [vmem:[#allocation8 + $0x3d8] sm:$0xff] }
 0x16c   :  { %2526 = vmatmul.mubr.f32.vlgmr.msra.gmra.mxu0 %v3271_v29  ;;  %2531 = vmatprep.subr.mxu1 %v701_v26 }
 0x16d   :  { %2569 = vmatprep.subr.mxu0 %v811_v27  ;;  %2490 = vmatprep.mubr.f32.mxu1 %v492_v31  ;;  %v1025_v31 = vld [vmem:[#allocation8 + $0x3c8] sm:$0xff] }
 0x16e   :  { %2528 = vmatprep.mubr.f32.mxu0 %v280_v32  ;;  %2532 = vmatpush3.msra.mxu1 %v701_v26  ;;  %v916_v26 = vld [vmem:[#allocation8 + $0x350] sm:$0xff]  ;;  %v914_v32 = vld [vmem:[#allocation8 + $0x340] sm:$0xff] }
 0x16f   :  { %2570 = vmatpush3.msra.mxu0 %v811_v27  ;;  %2533 = vmatprep.subr.mxu1 %v700_v30  ;;  %v1026_v27 = vld [vmem:[#allocation8 + $0x3d0] sm:$0xff] }
 0x170   :  { %2571 = vmatprep.subr.mxu0 %v810_v33  ;;  %2534 = vmatpush3.msra.mxu1 %v700_v30  ;;  %v915_v30 = vld [vmem:[#allocation8 + $0x348] sm:$0xff] }
 0x171   :  { %2572 = vmatpush3.msra.mxu0 %v810_v33  ;;  %2491 = vmatmul.mubr.f32.gmra.mxu1 %v3275_v36  ;;  %v913_v33 = vld [vmem:[#allocation8 + $0x338] sm:$0xff] }
 0x172   :  { %2529 = vmatmul.mubr.f32.gmra.mxu0 %v3277_v37  ;;  %2535 = vmatprep.subr.mxu1 %v699_v34 }
 0x173   :  { %2573 = vmatprep.subr.mxu0 %v809_v35  ;;  %2536 = vmatpush3.msra.mxu1 %v699_v34  ;;  %v1023_v34 = vld [vmem:[#allocation8 + $0x3b8] sm:$0xff] }
 0x174   :  { %2563 = vmatprep.mubr.f32.mxu1 %v681_v38  ;;  %2574 = vmatpush3.msra.mxu0 %v809_v35  ;;  %v912_v35 = vld [vmem:[#allocation8 + $0x330] sm:$0xff] }
 0x175   :  { %2601 = vmatprep.mubr.f32.mxu0 %v791_v42  ;;  %2537 = vmatprep.subr.mxu1 %v698_v39  ;;  %v1022_v38 = vld [vmem:[#allocation8 + $0x3b0] sm:$0xff]  ;;  %v910_v42 = vld [vmem:[#allocation8 + $0x320] sm:$0xff] }
 0x176   :  { %2575 = vmatprep.subr.mxu0 %v808_v41  ;;  %2538 = vmatpush3.msra.mxu1 %v698_v39  ;;  %v911_v39 = vld [vmem:[#allocation8 + $0x328] sm:$0xff] }
 0x177   :  { %2576 = vmatpush3.msra.mxu0 %v808_v41  ;;  %2539 = vmatprep.subr.mxu1 %v697_v44  ;;  %v1021_v41 = vld [vmem:[#allocation8 + $0x3a8] sm:$0xff] }
 0x178   :  { %2577 = vmatprep.subr.mxu0 %v807_v45  ;;  %2540 = vmatpush3.msra.mxu1 %v697_v44  ;;  %v1020_v44 = vld [vmem:[#allocation8 + $0x3a0] sm:$0xff] }
 0x179   :  { %2578 = vmatpush3.msra.mxu0 %v807_v45  ;;  %2541 = vmatprep.subr.mxu1 %v696_v47  ;;  %v909_v45 = vld [vmem:[#allocation8 + $0x318] sm:$0xff] }
 0x17a   :  { %2579 = vmatprep.subr.mxu0 %v806_v48  ;;  %2542 = vmatpush3.msra.mxu1 %v696_v47  ;;  %v1019_v47 = vld [vmem:[#allocation8 + $0x398] sm:$0xff] }
 0x17b   :  { %2580 = vmatpush3.msra.mxu0 %v806_v48  ;;  %2543 = vmatprep.subr.mxu1 %v695_v49  ;;  %v908_v48 = vld [vmem:[#allocation8 + $0x310] sm:$0xff] }
 0x17c   :  { %2581 = vmatprep.subr.mxu0 %v805_v50  ;;  %2544 = vmatpush3.msra.mxu1 %v695_v49  ;;  %v1018_v49 = vld [vmem:[#allocation8 + $0x390] sm:$0xff] }
 0x17d   :  { %2582 = vmatpush3.msra.mxu0 %v805_v50  ;;  %2545 = vmatprep.subr.mxu1 %v694_v52  ;;  %v907_v50 = vld [vmem:[#allocation8 + $0x308] sm:$0xff] }
 0x17e   :  { %2583 = vmatprep.subr.mxu0 %v804_v55  ;;  %2546 = vmatpush3.msra.mxu1 %v694_v52  ;;  %v1017_v52 = vld [vmem:[#allocation8 + $0x388] sm:$0xff] }
 0x17f   :  { %2584 = vmatpush3.msra.mxu0 %v804_v55  ;;  %2547 = vmatprep.subr.mxu1 %v693_v56  ;;  %v906_v55 = vld [vmem:[#allocation8 + $0x300] sm:$0xff] }
 0x180   :  { %2585 = vmatprep.subr.mxu0 %v803_v57  ;;  %2548 = vmatpush3.msra.mxu1 %v693_v56  ;;  %v1016_v56 = vld [vmem:[#allocation8 + $0x380] sm:$0xff] }
 0x181   :  { %2586 = vmatpush3.msra.mxu0 %v803_v57  ;;  %2549 = vmatprep.subr.mxu1 %v692_v58  ;;  %v1141_v57 = vld [vmem:[#allocation8 + $0x478] sm:$0xff] }
 0x182   :  { %2587 = vmatprep.subr.mxu0 %v802_v59  ;;  %2550 = vmatpush3.msra.mxu1 %v692_v58  ;;  %v1251_v58 = vld [vmem:[#allocation8 + $0x4f8] sm:$0xff] }
 0x183   :  { %2588 = vmatpush3.msra.mxu0 %v802_v59  ;;  %2551 = vmatprep.subr.mxu1 %v691_v60  ;;  %v3294_v59 = vld [vmem:[#allocation2 + $0xf] sm:$0xff] }
 0x184   :  { %2589 = vmatprep.subr.mxu0 %v801_v61  ;;  %2552 = vmatpush3.msra.mxu1 %v691_v60  ;;  %v903_v60 = vld [vmem:[#allocation2 + $0x27] sm:$0xff] }
 0x185   :  { %2590 = vmatpush3.msra.mxu0 %v801_v61  ;;  %2553 = vmatprep.subr.mxu1 %v690_v62  ;;  %v1140_v61 = vld [vmem:[#allocation8 + $0x470] sm:$0xff] }
 0x186   :  { %2591 = vmatprep.subr.mxu0 %v800_v63  ;;  %2554 = vmatpush3.msra.mxu1 %v690_v62  ;;  %v1250_v62 = vld [vmem:[#allocation8 + $0x4f0] sm:$0xff] }
 0x187   :  { %2592 = vmatpush3.msra.mxu0 %v800_v63  ;;  %2555 = vmatprep.subr.mxu1 %v689_v0  ;;  %v1139_v63 = vld [vmem:[#allocation8 + $0x468] sm:$0xff] }
 0x188   :  { %2593 = vmatprep.subr.mxu0 %v799_v2  ;;  %2556 = vmatpush3.msra.mxu1 %v689_v0  ;;  %v1249_v0 = vld [vmem:[#allocation8 + $0x4e8] sm:$0xff] }
 0x189   :  { %2594 = vmatpush3.msra.mxu0 %v799_v2  ;;  %2557 = vmatprep.subr.mxu1 %v688_v3  ;;  %v3299_v2 = vld [vmem:[#allocation2 + $0x2f] sm:$0xff] }
 0x18a   :  { %2595 = vmatprep.subr.mxu0 %v798_v4  ;;  %2558 = vmatpush3.msra.mxu1 %v688_v3  ;;  %v1248_v3 = vld [vmem:[#allocation8 + $0x4e0] sm:$0xff] }
 0x18b   :  { %2596 = vmatpush3.msra.mxu0 %v798_v4  ;;  %2559 = vmatprep.subr.mxu1 %v687_v5  ;;  %v1247_v4 = vld [vmem:[#allocation8 + $0x4d8] sm:$0xff] }
 0x18c   :  { %2597 = vmatprep.subr.mxu0 %v797_v6  ;;  %2560 = vmatpush3.msra.mxu1 %v687_v5  ;;  %v1136_v5 = vld [vmem:[#allocation8 + $0x450] sm:$0xff] }
 0x18d   :  { %2598 = vmatpush3.msra.mxu0 %v797_v6  ;;  %2561 = vmatprep.subr.mxu1 %v686_v7  ;;  %v1246_v6 = vld [vmem:[#allocation8 + $0x4d0] sm:$0xff] }
 0x18e   :  { %2599 = vmatprep.subr.mxu0 %v796_v8  ;;  %2562 = vmatpush3.msra.mxu1 %v686_v7  ;;  %v1245_v7 = vld [vmem:[#allocation8 + $0x4c8] sm:$0xff] }
 0x18f   :  { %2600 = vmatpush3.msra.mxu0 %v796_v8  ;;  %2564 = vmatmul.mubr.f32.vlgmr.msra.gmra.mxu1 %v3281_v11  ;;  %v1133_v8 = vld [vmem:[#allocation8 + $0x438] sm:$0xff] }
 0x190   :  { %2602 = vmatmul.mubr.f32.vlgmr.msra.gmra.mxu0 %v3283_v12  ;;  %2607 = vmatprep.subr.mxu1 %v921_v9 }
 0x191   :  { %2645 = vmatprep.subr.mxu0 %v1031_v10  ;;  %2566 = vmatprep.mubr.f32.mxu1 %v683_v14  ;;  %v1131_v14 = vld [vmem:[#allocation8 + $0x428] sm:$0xff] }
 0x192   :  { %2604 = vmatprep.mubr.f32.mxu0 %v793_v15  ;;  %2608 = vmatpush3.msra.mxu1 %v921_v9  ;;  %v1243_v9 = vld [vmem:[#allocation8 + $0x4b8] sm:$0xff]  ;;  %v1241_v15 = vld [vmem:[#allocation8 + $0x4a8] sm:$0xff] }
 0x193   :  { %2646 = vmatpush3.msra.mxu0 %v1031_v10  ;;  %2609 = vmatprep.subr.mxu1 %v920_v13  ;;  %v1132_v10 = vld [vmem:[#allocation8 + $0x430] sm:$0xff] }
 0x194   :  { %2647 = vmatprep.subr.mxu0 %v1030_v16  ;;  %2610 = vmatpush3.msra.mxu1 %v920_v13  ;;  %v1242_v13 = vld [vmem:[#allocation8 + $0x4b0] sm:$0xff] }
 0x195   :  { %2648 = vmatpush3.msra.mxu0 %v1030_v16  ;;  %2567 = vmatmul.mubr.f32.gmra.mxu1 %v3287_v19  ;;  %v1130_v16 = vld [vmem:[#allocation8 + $0x420] sm:$0xff] }
 0x196   :  { %2605 = vmatmul.mubr.f32.gmra.mxu0 %v3289_v20  ;;  %2611 = vmatprep.subr.mxu1 %v919_v17 }
 0x197   :  { %2649 = vmatprep.subr.mxu0 %v1029_v18  ;;  %2612 = vmatpush3.msra.mxu1 %v919_v17  ;;  %v1240_v17 = vld [vmem:[#allocation8 + $0x4a0] sm:$0xff] }
 0x198   :  { %2639 = vmatprep.mubr.f32.mxu1 %v901_v21  ;;  %2650 = vmatpush3.msra.mxu0 %v1029_v18  ;;  %v1129_v18 = vld [vmem:[#allocation8 + $0x418] sm:$0xff] }
 0x199   :  { %2677 = vmatprep.mubr.f32.mxu0 %v3246_v40  ;;  %2613 = vmatprep.subr.mxu1 %v918_v22  ;;  %v1024_v40 = vld [vmem:[#allocation8 + $0x3c0] sm:$0xff]  ;;  %v1239_v21 = vld [vmem:[#allocation8 + $0x498] sm:$0xff] }
 0x19a   :  { %2651 = vmatprep.subr.mxu0 %v1028_v23  ;;  %2614 = vmatpush3.msra.mxu1 %v918_v22  ;;  %v1128_v22 = vld [vmem:[#allocation8 + $0x410] sm:$0xff] }
 0x19b   :  { %2652 = vmatpush3.msra.mxu0 %v1028_v23  ;;  %2615 = vmatprep.subr.mxu1 %v917_v24  ;;  %v1238_v23 = vld [vmem:[#allocation8 + $0x490] sm:$0xff] }
 0x19c   :  { %2653 = vmatprep.subr.mxu0 %v1027_v25  ;;  %2616 = vmatpush3.msra.mxu1 %v917_v24  ;;  %v1127_v24 = vld [vmem:[#allocation8 + $0x408] sm:$0xff] }
 0x19d   :  { %2654 = vmatpush3.msra.mxu0 %v1027_v25  ;;  %2617 = vmatprep.subr.mxu1 %v916_v26  ;;  %v1237_v25 = vld [vmem:[#allocation8 + $0x488] sm:$0xff] }
 0x19e   :  { %2655 = vmatprep.subr.mxu0 %v1026_v27  ;;  %2618 = vmatpush3.msra.mxu1 %v916_v26  ;;  %v1126_v26 = vld [vmem:[#allocation8 + $0x400] sm:$0xff] }
 0x19f   :  { %2656 = vmatpush3.msra.mxu0 %v1026_v27  ;;  %2619 = vmatprep.subr.mxu1 %v915_v30  ;;  %v1236_v27 = vld [vmem:[#allocation8 + $0x480] sm:$0xff] }
 0x1a0   :  { %2657 = vmatprep.subr.mxu0 %v1025_v31  ;;  %2620 = vmatpush3.msra.mxu1 %v915_v30  ;;  %v1361_v30 = vld [vmem:[#allocation8 + $0x578] sm:$0xff] }
 0x1a1   :  { %2658 = vmatpush3.msra.mxu0 %v1025_v31  ;;  %2621 = vmatprep.subr.mxu1 %v914_v32  ;;  %v1471_v31 = vld [vmem:[#allocation8 + $0x5f8] sm:$0xff] }
 0x1a2   :  { %2659 = vmatprep.subr.mxu0 %v1024_v40  ;;  %2622 = vmatpush3.msra.mxu1 %v914_v32  ;;  %v1122_v32 = vld [vmem:[#allocation2 + $0x11] sm:$0xff] }
 0x1a3   :  { %2660 = vmatpush3.msra.mxu0 %v1024_v40  ;;  %2623 = vmatprep.subr.mxu1 %v913_v33  ;;  %v1232_v40 = vld [vmem:[#allocation2 + $0x12] sm:$0xff] }
 0x1a4   :  { %2661 = vmatprep.subr.mxu0 %v1023_v34  ;;  %2624 = vmatpush3.msra.mxu1 %v913_v33  ;;  %v1360_v33 = vld [vmem:[#allocation8 + $0x570] sm:$0xff] }
 0x1a5   :  { %2662 = vmatpush3.msra.mxu0 %v1023_v34  ;;  %2625 = vmatprep.subr.mxu1 %v912_v35  ;;  %v1470_v34 = vld [vmem:[#allocation8 + $0x5f0] sm:$0xff] }
 0x1a6   :  { %2663 = vmatprep.subr.mxu0 %v1022_v38  ;;  %2626 = vmatpush3.msra.mxu1 %v912_v35  ;;  %v1359_v35 = vld [vmem:[#allocation8 + $0x568] sm:$0xff] }
 0x1a7   :  { %2664 = vmatpush3.msra.mxu0 %v1022_v38  ;;  %2627 = vmatprep.subr.mxu1 %v911_v39  ;;  %v1469_v38 = vld [vmem:[#allocation8 + $0x5e8] sm:$0xff] }
 0x1a8   :  { %2665 = vmatprep.subr.mxu0 %v1021_v41  ;;  %2628 = vmatpush3.msra.mxu1 %v911_v39  ;;  %v1124_v39 = vld [vmem:[#allocation2 + $0x31] sm:$0xff] }
 0x1a9   :  { %2666 = vmatpush3.msra.mxu0 %v1021_v41  ;;  %2629 = vmatprep.subr.mxu1 %v910_v42  ;;  %v1234_v41 = vld [vmem:[#allocation2 + $0x32] sm:$0xff] }
 0x1aa   :  { %2667 = vmatprep.subr.mxu0 %v1020_v44  ;;  %2630 = vmatpush3.msra.mxu1 %v910_v42  ;;  %v1358_v42 = vld [vmem:[#allocation8 + $0x560] sm:$0xff] }
 0x1ab   :  { %2668 = vmatpush3.msra.mxu0 %v1020_v44  ;;  %2631 = vmatprep.subr.mxu1 %v909_v45  ;;  %v1468_v44 = vld [vmem:[#allocation8 + $0x5e0] sm:$0xff] }
 0x1ac   :  { %2669 = vmatprep.subr.mxu0 %v1019_v47  ;;  %2632 = vmatpush3.msra.mxu1 %v909_v45  ;;  %v1356_v45 = vld [vmem:[#allocation8 + $0x550] sm:$0xff] }
 0x1ad   :  { %2670 = vmatpush3.msra.mxu0 %v1019_v47  ;;  %2633 = vmatprep.subr.mxu1 %v908_v48  ;;  %v1466_v47 = vld [vmem:[#allocation8 + $0x5d0] sm:$0xff] }
 0x1ae   :  { %2671 = vmatprep.subr.mxu0 %v1018_v49  ;;  %2634 = vmatpush3.msra.mxu1 %v908_v48  ;;  %v1355_v48 = vld [vmem:[#allocation8 + $0x548] sm:$0xff] }
 0x1af   :  { %2672 = vmatpush3.msra.mxu0 %v1018_v49  ;;  %2635 = vmatprep.subr.mxu1 %v907_v50  ;;  %v1465_v49 = vld [vmem:[#allocation8 + $0x5c8] sm:$0xff] }
 0x1b0   :  { %2673 = vmatprep.subr.mxu0 %v1017_v52  ;;  %2636 = vmatpush3.msra.mxu1 %v907_v50  ;;  %v1353_v50 = vld [vmem:[#allocation8 + $0x538] sm:$0xff] }
 0x1b1   :  { %2674 = vmatpush3.msra.mxu0 %v1017_v52  ;;  %2637 = vmatprep.subr.mxu1 %v906_v55  ;;  %v1463_v52 = vld [vmem:[#allocation8 + $0x5b8] sm:$0xff] }
 0x1b2   :  { %2675 = vmatprep.subr.mxu0 %v1016_v56  ;;  %2638 = vmatpush3.msra.mxu1 %v906_v55  ;;  %v1352_v55 = vld [vmem:[#allocation8 + $0x530] sm:$0xff] }
 0x1b3   :  { %2676 = vmatpush3.msra.mxu0 %v1016_v56  ;;  %2640 = vmatmul.mubr.f32.vlgmr.msra.gmra.mxu1 %v3294_v59  ;;  %v1462_v56 = vld [vmem:[#allocation8 + $0x5b0] sm:$0xff] }
 0x1b4   :  { %2678 = vmatmul.mubr.f32.vlgmr.msra.gmra.mxu0 %v3249_v43  ;;  %2683 = vmatprep.subr.mxu1 %v1141_v57  ;;  %v1138_v43 = vld [vmem:[#allocation8 + $0x460] sm:$0xff] }
 0x1b5   :  { %2721 = vmatprep.subr.mxu0 %v1251_v58  ;;  %2642 = vmatprep.mubr.f32.mxu1 %v903_v60  ;;  %v1350_v60 = vld [vmem:[#allocation8 + $0x520] sm:$0xff] }
 0x1b6   :  { %2680 = vmatprep.mubr.f32.mxu0 %v3252_v46  ;;  %2684 = vmatpush3.msra.mxu1 %v1141_v57  ;;  %v1137_v46 = vld [vmem:[#allocation8 + $0x458] sm:$0xff]  ;;  %v1351_v57 = vld [vmem:[#allocation8 + $0x528] sm:$0xff] }
 0x1b7   :  { %2722 = vmatpush3.msra.mxu0 %v1251_v58  ;;  %2685 = vmatprep.subr.mxu1 %v1140_v61  ;;  %v1461_v58 = vld [vmem:[#allocation8 + $0x5a8] sm:$0xff] }
 0x1b8   :  { %2723 = vmatprep.subr.mxu0 %v1250_v62  ;;  %2686 = vmatpush3.msra.mxu1 %v1140_v61  ;;  %v1460_v61 = vld [vmem:[#allocation8 + $0x5a0] sm:$0xff] }
 0x1b9   :  { %2724 = vmatpush3.msra.mxu0 %v1250_v62  ;;  %2643 = vmatmul.mubr.f32.gmra.mxu1 %v3299_v2  ;;  %v1349_v62 = vld [vmem:[#allocation8 + $0x518] sm:$0xff] }
 0x1ba   :  { %2681 = vmatmul.mubr.f32.gmra.mxu0 %v3255_v51  ;;  %2687 = vmatprep.subr.mxu1 %v1139_v63  ;;  %v1135_v51 = vld [vmem:[#allocation8 + $0x448] sm:$0xff] }
 0x1bb   :  { %2725 = vmatprep.subr.mxu0 %v1249_v0  ;;  %2688 = vmatpush3.msra.mxu1 %v1139_v63  ;;  %v1459_v63 = vld [vmem:[#allocation8 + $0x598] sm:$0xff] }
 0x1bc   :  { %2715 = vmatprep.mubr.f32.mxu1 %v3259_v54  ;;  %2726 = vmatpush3.msra.mxu0 %v1249_v0  ;;  %v1134_v54 = vld [vmem:[#allocation8 + $0x440] sm:$0xff]  ;;  %v1348_v0 = vld [vmem:[#allocation8 + $0x510] sm:$0xff] }
 0x1bd   :  { %2753 = vmatprep.mubr.f32.mxu0 %v3271_v29  ;;  %2689 = vmatprep.subr.mxu1 %v1138_v43  ;;  %v1244_v29 = vld [vmem:[#allocation8 + $0x4c0] sm:$0xff] }
 0x1be   :  { %2727 = vmatprep.subr.mxu0 %v1248_v3  ;;  %2690 = vmatpush3.msra.mxu1 %v1138_v43  ;;  %v1458_v43 = vld [vmem:[#allocation8 + $0x590] sm:$0xff] }
 0x1bf   :  { %2728 = vmatpush3.msra.mxu0 %v1248_v3  ;;  %2691 = vmatprep.subr.mxu1 %v1137_v46  ;;  %v1347_v3 = vld [vmem:[#allocation8 + $0x508] sm:$0xff] }
 0x1c0   :  { %2729 = vmatprep.subr.mxu0 %v1247_v4  ;;  %2692 = vmatpush3.msra.mxu1 %v1137_v46  ;;  %v1457_v46 = vld [vmem:[#allocation8 + $0x588] sm:$0xff] }
 0x1c1   :  { %2730 = vmatpush3.msra.mxu0 %v1247_v4  ;;  %2693 = vmatprep.subr.mxu1 %v1136_v5  ;;  %v1346_v4 = vld [vmem:[#allocation8 + $0x500] sm:$0xff] }
 0x1c2   :  { %2731 = vmatprep.subr.mxu0 %v1246_v6  ;;  %2694 = vmatpush3.msra.mxu1 %v1136_v5  ;;  %v1456_v5 = vld [vmem:[#allocation8 + $0x580] sm:$0xff] }
 0x1c3   :  { %2732 = vmatpush3.msra.mxu0 %v1246_v6  ;;  %2695 = vmatprep.subr.mxu1 %v1135_v51  ;;  %v1581_v6 = vld [vmem:[#allocation8 + $0x678] sm:$0xff] }
 0x1c4   :  { %2733 = vmatprep.subr.mxu0 %v1245_v7  ;;  %2696 = vmatpush3.msra.mxu1 %v1135_v51  ;;  %v1691_v51 = vld [vmem:[#allocation8 + $0x6f8] sm:$0xff] }
 0x1c5   :  { %2734 = vmatpush3.msra.mxu0 %v1245_v7  ;;  %2697 = vmatprep.subr.mxu1 %v1134_v54  ;;  %v1342_v7 = vld [vmem:[#allocation2 + $0x13] sm:$0xff] }
 0x1c6   :  { %2735 = vmatprep.subr.mxu0 %v1244_v29  ;;  %2698 = vmatpush3.msra.mxu1 %v1134_v54  ;;  %v1452_v54 = vld [vmem:[#allocation2 + $0x14] sm:$0xff] }
 0x1c7   :  { %2736 = vmatpush3.msra.mxu0 %v1244_v29  ;;  %2699 = vmatprep.subr.mxu1 %v1133_v8  ;;  %v1343_v29 = vld [vmem:[#allocation2 + $0x2b] sm:$0xff] }
 0x1c8   :  { %2737 = vmatprep.subr.mxu0 %v1243_v9  ;;  %2700 = vmatpush3.msra.mxu1 %v1133_v8  ;;  %v1580_v8 = vld [vmem:[#allocation8 + $0x670] sm:$0xff] }
 0x1c9   :  { %2738 = vmatpush3.msra.mxu0 %v1243_v9  ;;  %2701 = vmatprep.subr.mxu1 %v1132_v10  ;;  %v1690_v9 = vld [vmem:[#allocation8 + $0x6f0] sm:$0xff] }
 0x1ca   :  { %2739 = vmatprep.subr.mxu0 %v1242_v13  ;;  %2702 = vmatpush3.msra.mxu1 %v1132_v10  ;;  %v1579_v10 = vld [vmem:[#allocation8 + $0x668] sm:$0xff] }
 0x1cb   :  { %2740 = vmatpush3.msra.mxu0 %v1242_v13  ;;  %2703 = vmatprep.subr.mxu1 %v1131_v14  ;;  %v1689_v13 = vld [vmem:[#allocation8 + $0x6e8] sm:$0xff] }
 0x1cc   :  { %2741 = vmatprep.subr.mxu0 %v1241_v15  ;;  %2704 = vmatpush3.msra.mxu1 %v1131_v14  ;;  %v1344_v14 = vld [vmem:[#allocation2 + $0x33] sm:$0xff] }
 0x1cd   :  { %2742 = vmatpush3.msra.mxu0 %v1241_v15  ;;  %2705 = vmatprep.subr.mxu1 %v1130_v16  ;;  %v1454_v15 = vld [vmem:[#allocation2 + $0x34] sm:$0xff] }
 0x1ce   :  { %2743 = vmatprep.subr.mxu0 %v1240_v17  ;;  %2706 = vmatpush3.msra.mxu1 %v1130_v16  ;;  %v1578_v16 = vld [vmem:[#allocation8 + $0x660] sm:$0xff] }
 0x1cf   :  { %2744 = vmatpush3.msra.mxu0 %v1240_v17  ;;  %2707 = vmatprep.subr.mxu1 %v1129_v18  ;;  %v1688_v17 = vld [vmem:[#allocation8 + $0x6e0] sm:$0xff] }
 0x1d0   :  { %2745 = vmatprep.subr.mxu0 %v1239_v21  ;;  %2708 = vmatpush3.msra.mxu1 %v1129_v18  ;;  %v1687_v18 = vld [vmem:[#allocation8 + $0x6d8] sm:$0xff] }
 0x1d1   :  { %2746 = vmatpush3.msra.mxu0 %v1239_v21  ;;  %2709 = vmatprep.subr.mxu1 %v1128_v22  ;;  %v1576_v21 = vld [vmem:[#allocation8 + $0x650] sm:$0xff] }
 0x1d2   :  { %2747 = vmatprep.subr.mxu0 %v1238_v23  ;;  %2710 = vmatpush3.msra.mxu1 %v1128_v22  ;;  %v1686_v22 = vld [vmem:[#allocation8 + $0x6d0] sm:$0xff] }
 0x1d3   :  { %2748 = vmatpush3.msra.mxu0 %v1238_v23  ;;  %2711 = vmatprep.subr.mxu1 %v1127_v24  ;;  %v1575_v23 = vld [vmem:[#allocation8 + $0x648] sm:$0xff] }
 0x1d4   :  { %2749 = vmatprep.subr.mxu0 %v1237_v25  ;;  %2712 = vmatpush3.msra.mxu1 %v1127_v24  ;;  %v1685_v24 = vld [vmem:[#allocation8 + $0x6c8] sm:$0xff] }
 0x1d5   :  { %2750 = vmatpush3.msra.mxu0 %v1237_v25  ;;  %2713 = vmatprep.subr.mxu1 %v1126_v26  ;;  %v1573_v25 = vld [vmem:[#allocation8 + $0x638] sm:$0xff] }
 0x1d6   :  { %2751 = vmatprep.subr.mxu0 %v1236_v27  ;;  %2714 = vmatpush3.msra.mxu1 %v1126_v26  ;;  %v1683_v26 = vld [vmem:[#allocation8 + $0x6b8] sm:$0xff] }
 0x1d7   :  { %2752 = vmatpush3.msra.mxu0 %v1236_v27  ;;  %2716 = vmatmul.mubr.f32.vlgmr.msra.gmra.mxu1 %v1122_v32  ;;  %v1572_v27 = vld [vmem:[#allocation8 + $0x630] sm:$0xff]  ;;  %v1681_v32 = vld [vmem:[#allocation8 + $0x6a8] sm:$0xff] }
 0x1d8   :  { %2754 = vmatmul.mubr.f32.vlgmr.msra.gmra.mxu0 %v1232_v40  ;;  %2759 = vmatprep.subr.mxu1 %v1361_v30  ;;  %v1570_v40 = vld [vmem:[#allocation8 + $0x620] sm:$0xff] }
 0x1d9   :  { %2797 = vmatprep.subr.mxu0 %v1471_v31  ;;  %2718 = vmatprep.mubr.f32.mxu1 %v3266_v1  ;;  %v1357_v1 = vld [vmem:[#allocation8 + $0x558] sm:$0xff] }
 0x1da   :  { %2756 = vmatprep.mubr.f32.mxu0 %v3277_v37  ;;  %2760 = vmatpush3.msra.mxu1 %v1361_v30  ;;  %v1467_v37 = vld [vmem:[#allocation8 + $0x5d8] sm:$0xff]  ;;  %v1682_v30 = vld [vmem:[#allocation8 + $0x6b0] sm:$0xff] }
 0x1db   :  { %2798 = vmatpush3.msra.mxu0 %v1471_v31  ;;  %2761 = vmatprep.subr.mxu1 %v1360_v33  ;;  %v1571_v31 = vld [vmem:[#allocation8 + $0x628] sm:$0xff] }
 0x1dc   :  { %2799 = vmatprep.subr.mxu0 %v1470_v34  ;;  %2762 = vmatpush3.msra.mxu1 %v1360_v33  ;;  %v1680_v33 = vld [vmem:[#allocation8 + $0x6a0] sm:$0xff] }
 0x1dd   :  { %2800 = vmatpush3.msra.mxu0 %v1470_v34  ;;  %2719 = vmatmul.mubr.f32.gmra.mxu1 %v1124_v39  ;;  %v1569_v34 = vld [vmem:[#allocation8 + $0x618] sm:$0xff]  ;;  %v1678_v39 = vld [vmem:[#allocation8 + $0x690] sm:$0xff] }
 0x1de   :  { %2757 = vmatmul.mubr.f32.gmra.mxu0 %v1234_v41  ;;  %2763 = vmatprep.subr.mxu1 %v1359_v35  ;;  %v1567_v41 = vld [vmem:[#allocation8 + $0x608] sm:$0xff] }
 0x1df   :  { %2801 = vmatprep.subr.mxu0 %v1469_v38  ;;  %2764 = vmatpush3.msra.mxu1 %v1359_v35  ;;  %v1679_v35 = vld [vmem:[#allocation8 + $0x698] sm:$0xff] }
 0x1e0   :  { %2791 = vmatprep.mubr.f32.mxu1 %v3257_v53  ;;  %2802 = vmatpush3.msra.mxu0 %v1469_v38  ;;  %v1354_v53 = vld [vmem:[#allocation8 + $0x540] sm:$0xff]  ;;  %v1568_v38 = vld [vmem:[#allocation8 + $0x610] sm:$0xff] }
 0x1e1   :  { %2829 = vmatprep.mubr.f32.mxu0 %v3269_v28  ;;  %2765 = vmatprep.subr.mxu1 %v1358_v42  ;;  %v1464_v28 = vld [vmem:[#allocation8 + $0x5c0] sm:$0xff] }
 0x1e2   :  { %2803 = vmatprep.subr.mxu0 %v1468_v44  ;;  %2766 = vmatpush3.msra.mxu1 %v1358_v42  ;;  %v1677_v42 = vld [vmem:[#allocation8 + $0x688] sm:$0xff] }
 0x1e3   :  { %2804 = vmatpush3.msra.mxu0 %v1468_v44  ;;  %2767 = vmatprep.subr.mxu1 %v1357_v1  ;;  %v1566_v44 = vld [vmem:[#allocation8 + $0x600] sm:$0xff] }
 0x1e4   :  { %2805 = vmatprep.subr.mxu0 %v1467_v37  ;;  %2768 = vmatpush3.msra.mxu1 %v1357_v1  ;;  %v1676_v1 = vld [vmem:[#allocation8 + $0x680] sm:$0xff] }
 0x1e5   :  { %2806 = vmatpush3.msra.mxu0 %v1467_v37  ;;  %2769 = vmatprep.subr.mxu1 %v1356_v45  ;;  %v1801_v37 = vld [vmem:[#allocation8 + $0x778] sm:$0xff] }
 0x1e6   :  { %2807 = vmatprep.subr.mxu0 %v1466_v47  ;;  %2770 = vmatpush3.msra.mxu1 %v1356_v45  ;;  %v1562_v45 = vld [vmem:[#allocation2 + $0x15] sm:$0xff] }
 0x1e7   :  { %2808 = vmatpush3.msra.mxu0 %v1466_v47  ;;  %2771 = vmatprep.subr.mxu1 %v1355_v48  ;;  %v1672_v47 = vld [vmem:[#allocation2 + $0x16] sm:$0xff] }
 0x1e8   :  { %2809 = vmatprep.subr.mxu0 %v1465_v49  ;;  %2772 = vmatpush3.msra.mxu1 %v1355_v48  ;;  %v1800_v48 = vld [vmem:[#allocation8 + $0x770] sm:$0xff] }
 0x1e9   :  { %2810 = vmatpush3.msra.mxu0 %v1465_v49  ;;  %2773 = vmatprep.subr.mxu1 %v1354_v53  ;;  %v1799_v49 = vld [vmem:[#allocation8 + $0x768] sm:$0xff] }
 0x1ea   :  { %2811 = vmatprep.subr.mxu0 %v1464_v28  ;;  %2774 = vmatpush3.msra.mxu1 %v1354_v53  ;;  %v1674_v53 = vld [vmem:[#allocation2 + $0x36] sm:$0xff] }
 0x1eb   :  { %2812 = vmatpush3.msra.mxu0 %v1464_v28  ;;  %2775 = vmatprep.subr.mxu1 %v1353_v50  ;;  %v1564_v28 = vld [vmem:[#allocation2 + $0x35] sm:$0xff] }
 0x1ec   :  { %2813 = vmatprep.subr.mxu0 %v1463_v52  ;;  %2776 = vmatpush3.msra.mxu1 %v1353_v50  ;;  %v1798_v50 = vld [vmem:[#allocation8 + $0x760] sm:$0xff] }
 0x1ed   :  { %2814 = vmatpush3.msra.mxu0 %v1463_v52  ;;  %2777 = vmatprep.subr.mxu1 %v1352_v55  ;;  %v1797_v52 = vld [vmem:[#allocation8 + $0x758] sm:$0xff] }
 0x1ee   :  { %2815 = vmatprep.subr.mxu0 %v1462_v56  ;;  %2778 = vmatpush3.msra.mxu1 %v1352_v55  ;;  %v1796_v55 = vld [vmem:[#allocation8 + $0x750] sm:$0xff] }
 0x1ef   :  { %2816 = vmatpush3.msra.mxu0 %v1462_v56  ;;  %2779 = vmatprep.subr.mxu1 %v1351_v57  ;;  %v1793_v56 = vld [vmem:[#allocation8 + $0x738] sm:$0xff] }
 0x1f0   :  { %2817 = vmatprep.subr.mxu0 %v1461_v58  ;;  %2780 = vmatpush3.msra.mxu1 %v1351_v57  ;;  %v1792_v57 = vld [vmem:[#allocation8 + $0x730] sm:$0xff] }
 0x1f1   :  { %2818 = vmatpush3.msra.mxu0 %v1461_v58  ;;  %2781 = vmatprep.subr.mxu1 %v1350_v60  ;;  %v1791_v58 = vld [vmem:[#allocation8 + $0x728] sm:$0xff] }
 0x1f2   :  { %2819 = vmatprep.subr.mxu0 %v1460_v61  ;;  %2782 = vmatpush3.msra.mxu1 %v1350_v60  ;;  %v1789_v60 = vld [vmem:[#allocation8 + $0x718] sm:$0xff] }
 0x1f3   :  { %2820 = vmatpush3.msra.mxu0 %v1460_v61  ;;  %2783 = vmatprep.subr.mxu1 %v1349_v62  ;;  %v1788_v61 = vld [vmem:[#allocation8 + $0x710] sm:$0xff] }
 0x1f4   :  { %2821 = vmatprep.subr.mxu0 %v1459_v63  ;;  %2784 = vmatpush3.msra.mxu1 %v1349_v62  ;;  %v1787_v62 = vld [vmem:[#allocation8 + $0x708] sm:$0xff] }
 0x1f5   :  { %2822 = vmatpush3.msra.mxu0 %v1459_v63  ;;  %2785 = vmatprep.subr.mxu1 %v1348_v0  ;;  %v1786_v63 = vld [vmem:[#allocation8 + $0x700] sm:$0xff] }
 0x1f6   :  { %2823 = vmatprep.subr.mxu0 %v1458_v43  ;;  %2786 = vmatpush3.msra.mxu1 %v1348_v0  ;;  %v1782_v0 = vld [vmem:[#allocation2 + $0x17] sm:$0xff] }
 0x1f7   :  { %2824 = vmatpush3.msra.mxu0 %v1458_v43  ;;  %2787 = vmatprep.subr.mxu1 %v1347_v3  ;;  %v1784_v43 = vld [vmem:[#allocation2 + $0x37] sm:$0xff] }
 0x1f8   :  { %2825 = vmatprep.subr.mxu0 %v1457_v46  ;;  %2788 = vmatpush3.msra.mxu1 %v1347_v3  ;;  %v1936_v3 = vld [vmem:[#allocation9 + $0x78] sm:$0xff] }
 0x1f9   :  { %2826 = vmatpush3.msra.mxu0 %v1457_v46  ;;  %2789 = vmatprep.subr.mxu1 %v1346_v4  ;;  %v1935_v46 = vld [vmem:[#allocation9 + $0x70] sm:$0xff] }
 0x1fa   :  { %2827 = vmatprep.subr.mxu0 %v1456_v5  ;;  %2790 = vmatpush3.msra.mxu1 %v1346_v4  ;;  %v1934_v4 = vld [vmem:[#allocation9 + $0x68] sm:$0xff] }
 0x1fb   :  { %2828 = vmatpush3.msra.mxu0 %v1456_v5  ;;  %2792 = vmatmul.mubr.f32.vlgmr.msra.gmra.mxu1 %v1342_v7  ;;  %v1933_v5 = vld [vmem:[#allocation9 + $0x60] sm:$0xff] }
 0x1fc   :  { %2830 = vmatmul.mubr.f32.vlgmr.msra.gmra.mxu0 %v1452_v54  ;;  %2835 = vmatprep.subr.mxu1 %v1581_v6  ;;  %v1929_v7 = vld [vmem:[#allocation9 + $0x40] sm:$0xff]  ;;  %v1928_v54 = vld [vmem:[#allocation9 + $0x38] sm:$0xff] }
 0x1fd   :  { %2873 = vmatprep.subr.mxu0 %v1691_v51  ;;  %2794 = vmatprep.mubr.f32.mxu1 %v1343_v29  ;;  %v1927_v29 = vld [vmem:[#allocation9 + $0x30] sm:$0xff] }
 0x1fe   :  { %2832 = vmatprep.mubr.f32.mxu0 %v3275_v36  ;;  %2836 = vmatpush3.msra.mxu1 %v1581_v6  ;;  %v1577_v36 = vld [vmem:[#allocation8 + $0x658] sm:$0xff] }
 0x1ff   :  { %2874 = vmatpush3.msra.mxu0 %v1691_v51  ;;  %2837 = vmatprep.subr.mxu1 %v1580_v8  ;;  %v1932_v6 = vld [vmem:[#allocation9 + $0x58] sm:$0xff]  ;;  %v1930_v51 = vld [vmem:[#allocation9 + $0x48] sm:$0xff] }
 0x200   :  { %2875 = vmatprep.subr.mxu0 %v1690_v9  ;;  %2838 = vmatpush3.msra.mxu1 %v1580_v8  ;;  %v1926_v8 = vld [vmem:[#allocation9 + $0x28] sm:$0xff] }
 0x201   :  { %2876 = vmatpush3.msra.mxu0 %v1690_v9  ;;  %2795 = vmatmul.mubr.f32.gmra.mxu1 %v1344_v14  ;;  %v1925_v9 = vld [vmem:[#allocation9 + $0x20] sm:$0xff]  ;;  %v1922_v14 = vld [vmem:[#allocation9 + $0x8] sm:$0xff] }
 0x202   :  { %2833 = vmatmul.mubr.f32.gmra.mxu0 %v1454_v15  ;;  %2839 = vmatprep.subr.mxu1 %v1579_v10  ;;  %v1921_v15 = vld [vmem:[#allocation9] sm:$0xff] }
 0x203   :  { %2877 = vmatprep.subr.mxu0 %v1689_v13  ;;  %2840 = vmatpush3.msra.mxu1 %v1579_v10  ;;  %v1924_v10 = vld [vmem:[#allocation9 + $0x18] sm:$0xff] }
 0x204   :  { %2867 = vmatprep.mubr.f32.mxu1 %v3281_v11  ;;  %2878 = vmatpush3.msra.mxu0 %v1689_v13  ;;  %v1574_v11 = vld [vmem:[#allocation8 + $0x640] sm:$0xff]  ;;  %v1923_v13 = vld [vmem:[#allocation9 + $0x10] sm:$0xff] }
 0x205   :  { %2905 = vmatprep.mubr.f32.mxu0 %v3283_v12  ;;  %2841 = vmatprep.subr.mxu1 %v1578_v16  ;;  %v1684_v12 = vld [vmem:[#allocation8 + $0x6c0] sm:$0xff] }
 0x206   :  { %2879 = vmatprep.subr.mxu0 %v1688_v17  ;;  %2842 = vmatpush3.msra.mxu1 %v1578_v16 }
 0x207   :  { %2880 = vmatpush3.msra.mxu0 %v1688_v17  ;;  %2843 = vmatprep.subr.mxu1 %v1577_v36 }
 0x208   :  { %2881 = vmatprep.subr.mxu0 %v1687_v18  ;;  %2844 = vmatpush3.msra.mxu1 %v1577_v36  ;;  %v2413_v16 = vpop.f32.mrf.mxu1 }
 0x209   :  { %2882 = vmatpush3.msra.mxu0 %v1687_v18  ;;  %2845 = vmatprep.subr.mxu1 %v1576_v21  ;;  %v2451_v36 = vpop.f32.mrf.mxu0 }
 0x20a   :  { %2883 = vmatprep.subr.mxu0 %v1686_v22  ;;  %2846 = vmatpush3.msra.mxu1 %v1576_v21  ;;  %v386_v17 = vpop.f32.mrf.mxu1 }
 0x20b   :  { %2884 = vmatpush3.msra.mxu0 %v1686_v22  ;;  %2847 = vmatprep.subr.mxu1 %v1575_v23  ;;  %v471_v21 = vpop.f32.mrf.mxu0 }
 0x20c   :  { %2885 = vmatprep.subr.mxu0 %v1685_v24  ;;  %2848 = vmatpush3.msra.mxu1 %v1575_v23 }
 0x20d   :  { %2886 = vmatpush3.msra.mxu0 %v1685_v24  ;;  %2849 = vmatprep.subr.mxu1 %v1574_v11 }
 0x20e   :  { %2887 = vmatprep.subr.mxu0 %v1684_v12  ;;  %2850 = vmatpush3.msra.mxu1 %v1574_v11 }
 0x20f   :  { %2888 = vmatpush3.msra.mxu0 %v1684_v12  ;;  %2851 = vmatprep.subr.mxu1 %v1573_v25 }
 0x210   :  { %2889 = vmatprep.subr.mxu0 %v1683_v26  ;;  %2852 = vmatpush3.msra.mxu1 %v1573_v25 }
 0x211   :  { %2890 = vmatpush3.msra.mxu0 %v1683_v26  ;;  %2853 = vmatprep.subr.mxu1 %v1572_v27 }
 0x212   :  { %2891 = vmatprep.subr.mxu0 %v1682_v30  ;;  %2854 = vmatpush3.msra.mxu1 %v1572_v27  ;;  %v2416_v18 = vpop.f32.mrf.mxu1 }
 0x213   :  { %2892 = vmatpush3.msra.mxu0 %v1682_v30  ;;  %2855 = vmatprep.subr.mxu1 %v1571_v31  ;;  %v2454_v23 = vpop.f32.mrf.mxu0 }
 0x214   :  { %2893 = vmatprep.subr.mxu0 %v1681_v32  ;;  %2856 = vmatpush3.msra.mxu1 %v1571_v31  ;;  %v396_v22 = vpop.f32.mrf.mxu1 }
 0x215   :  { %2894 = vmatpush3.msra.mxu0 %v1681_v32  ;;  %2857 = vmatprep.subr.mxu1 %v1570_v40  ;;  %v481_v11 = vpop.f32.mrf.mxu0 }
 0x216   :  { %2895 = vmatprep.subr.mxu0 %v1680_v33  ;;  %2858 = vmatpush3.msra.mxu1 %v1570_v40 }
 0x217   :  { %2896 = vmatpush3.msra.mxu0 %v1680_v33  ;;  %2859 = vmatprep.subr.mxu1 %v1569_v34 }
 0x218   :  { %2897 = vmatprep.subr.mxu0 %v1679_v35  ;;  %2860 = vmatpush3.msra.mxu1 %v1569_v34 }
 0x219   :  { %2898 = vmatpush3.msra.mxu0 %v1679_v35  ;;  %2861 = vmatprep.subr.mxu1 %v1568_v38 }
 0x21a   :  { %2899 = vmatprep.subr.mxu0 %v1678_v39  ;;  %2862 = vmatpush3.msra.mxu1 %v1568_v38 }
 0x21b   :  { %2900 = vmatpush3.msra.mxu0 %v1678_v39  ;;  %2863 = vmatprep.subr.mxu1 %v1567_v41 }
 0x21c   :  { %2901 = vmatprep.subr.mxu0 %v1677_v42  ;;  %2864 = vmatpush3.msra.mxu1 %v1567_v41 }
 0x21d   :  { %2902 = vmatpush3.msra.mxu0 %v1677_v42  ;;  %2865 = vmatprep.subr.mxu1 %v1566_v44 }
 0x21e   :  { %2903 = vmatprep.subr.mxu0 %v1676_v1  ;;  %2866 = vmatpush3.msra.mxu1 %v1566_v44 }
 0x21f   :  { %2904 = vmatpush3.msra.mxu0 %v1676_v1  ;;  %2868 = vmatmul.mubr.f32.vlgmr.msra.gmra.mxu1 %v1562_v45 }
 0x220   :  { %2906 = vmatmul.mubr.f32.vlgmr.msra.gmra.mxu0 %v1672_v47  ;;  %2911 = vmatprep.subr.mxu1 %v1801_v37 }
 0x221   :  { %2870 = vmatprep.mubr.f32.mxu1 %v3287_v19  ;;  %2908 = vmatprep.mubr.f32.mxu0 %v3289_v20  ;;  %v1795_v19 = vld [vmem:[#allocation8 + $0x748] sm:$0xff]  ;;  %v1794_v20 = vld [vmem:[#allocation8 + $0x740] sm:$0xff] }
 0x222   :  { %2912 = vmatpush3.msra.mxu1 %v1801_v37  ;;  %2949 = vmatprep.subr.mxu0 %v1936_v3 }
 0x223   :  { %2913 = vmatprep.subr.mxu1 %v1800_v48  ;;  %2871 = vmatmul.mubr.f32.gmra.mxu1 %v1564_v28 }
 0x224   :  { %2914 = vmatpush3.msra.mxu1 %v1800_v48  ;;  %2909 = vmatmul.mubr.f32.gmra.mxu0 %v1674_v53 }
 0x225   :  { %2915 = vmatprep.subr.mxu1 %v1799_v49  ;;  %2943 = vmatprep.mubr.f32.mxu1 %v3294_v59  ;;  %v1790_v59 = vld [vmem:[#allocation8 + $0x720] sm:$0xff] }
 0x226   :  { %2916 = vmatpush3.msra.mxu1 %v1799_v49  ;;  %2950 = vmatpush3.msra.mxu0 %v1936_v3 }
 0x227   :  { %2917 = vmatprep.subr.mxu1 %v1798_v50  ;;  %2951 = vmatprep.subr.mxu0 %v1935_v46 }
 0x228   :  { %2918 = vmatpush3.msra.mxu1 %v1798_v50  ;;  %2952 = vmatpush3.msra.mxu0 %v1935_v46 }
 0x229   :  { %2919 = vmatprep.subr.mxu1 %v1797_v52  ;;  %2953 = vmatprep.subr.mxu0 %v1934_v4 }
 0x22a   :  { %2920 = vmatpush3.msra.mxu1 %v1797_v52  ;;  %2954 = vmatpush3.msra.mxu0 %v1934_v4 }
 0x22b   :  { %2921 = vmatprep.subr.mxu1 %v1796_v55  ;;  %2955 = vmatprep.subr.mxu0 %v1933_v5  ;;  %v2489_v24 = vpop.f32.mrf.mxu1 }
 0x22c   :  { %2922 = vmatpush3.msra.mxu1 %v1796_v55  ;;  %2956 = vmatpush3.msra.mxu0 %v1933_v5  ;;  %v2527_v25 = vpop.f32.mrf.mxu0 }
 0x22d   :  { %2923 = vmatprep.subr.mxu1 %v1795_v19  ;;  %2957 = vmatprep.subr.mxu0 %v1932_v6  ;;  %v577_v12 = vpop.f32.mrf.mxu1 }
 0x22e   :  { %2924 = vmatpush3.msra.mxu1 %v1795_v19  ;;  %2958 = vmatpush3.msra.mxu0 %v1932_v6  ;;  %v662_v27 = vpop.f32.mrf.mxu0 }
 0x22f   :  { %2925 = vmatprep.subr.mxu1 %v1794_v20 }
 0x230   :  { %2926 = vmatpush3.msra.mxu1 %v1794_v20 }
 0x231   :  { %2927 = vmatprep.subr.mxu1 %v1793_v56  ;;  %v2492_v26 = vpop.f32.mrf.mxu1 }
 0x232   :  { %2928 = vmatpush3.msra.mxu1 %v1793_v56  ;;  %v2530_v31 = vpop.f32.mrf.mxu0 }
 0x233   :  { %2929 = vmatprep.subr.mxu1 %v1792_v57  ;;  %v587_v30 = vpop.f32.mrf.mxu1 }
 0x234   :  { %2930 = vmatpush3.msra.mxu1 %v1792_v57  ;;  %v672_v40 = vpop.f32.mrf.mxu0 }
 0x235   :  { %2931 = vmatprep.subr.mxu1 %v1791_v58 }
 0x236   :  { %2932 = vmatpush3.msra.mxu1 %v1791_v58 }
 0x237   :  { %2933 = vmatprep.subr.mxu1 %v1790_v59 }
 0x238   :  { %2934 = vmatpush3.msra.mxu1 %v1790_v59 }
 0x239   :  { %2935 = vmatprep.subr.mxu1 %v1789_v60 }
 0x23a   :  { %2936 = vmatpush3.msra.mxu1 %v1789_v60 }
 0x23b   :  { %2937 = vmatprep.subr.mxu1 %v1788_v61 }
 0x23c   :  { %2938 = vmatpush3.msra.mxu1 %v1788_v61 }
 0x23d   :  { %2939 = vmatprep.subr.mxu1 %v1787_v62 }
 0x23e   :  { %2940 = vmatpush3.msra.mxu1 %v1787_v62 }
 0x23f   :  { %2941 = vmatprep.subr.mxu1 %v1786_v63 }
 0x240   :  { %2942 = vmatpush3.msra.mxu1 %v1786_v63 }
 0x241   :  { %2944 = vmatmul.mubr.f32.vlgmr.msra.gmra.mxu1 %v1782_v0  ;;  %2987 = vmatprep.subr.mxu1 %v1936_v3 }
 0x242   :  { %2946 = vmatprep.mubr.f32.mxu1 %v3299_v2  ;;  %3003 = vmatpush3.msra.mxu1 %v1936_v3  ;;  %v1931_v2 = vld [vmem:[#allocation9 + $0x50] sm:$0xff]  ;;  %v477_v3 = vadd.f32 %v2451_v36, %v2413_v16 }
 0x243   :  { %2988 = vmatprep.subr.mxu1 %v1935_v46  ;;  %2959 = vmatprep.subr.mxu0 %v1931_v2 }
 0x244   :  { %3004 = vmatpush3.msra.mxu1 %v1935_v46  ;;  %2960 = vmatpush3.msra.mxu0 %v1931_v2 }
 0x245   :  { %2947 = vmatmul.mubr.f32.gmra.mxu1 %v1784_v43  ;;  %2989 = vmatprep.subr.mxu1 %v1934_v4 }
 0x246   :  { %3005 = vmatpush3.msra.mxu1 %v1934_v4  ;;  %2961 = vmatprep.subr.mxu0 %v1930_v51 }
 0x247   :  { %2990 = vmatprep.subr.mxu1 %v1933_v5  ;;  %2962 = vmatpush3.msra.mxu0 %v1930_v51 }
 0x248   :  { %3006 = vmatpush3.msra.mxu1 %v1933_v5  ;;  %2963 = vmatprep.subr.mxu0 %v1929_v7  ;;  %v472_v5 = vadd.f32 %v471_v21, %v386_v17 }
 0x249   :  { %2991 = vmatprep.subr.mxu1 %v1932_v6  ;;  %2964 = vmatpush3.msra.mxu0 %v1929_v7 }
 0x24a   :  { %3007 = vmatpush3.msra.mxu1 %v1932_v6  ;;  %2965 = vmatprep.subr.mxu0 %v1928_v54  ;;  %v668_v6 = vadd.f32 %v2527_v25, %v2489_v24  ;;  %v673_v24 = vadd.f32 %v672_v40, %v587_v30 }
 0x24b   :  { %2992 = vmatprep.subr.mxu1 %v1931_v2  ;;  %2966 = vmatpush3.msra.mxu0 %v1928_v54 }
 0x24c   :  { %3008 = vmatpush3.msra.mxu1 %v1931_v2  ;;  %2967 = vmatprep.subr.mxu0 %v1927_v29 }
 0x24d   :  { %2993 = vmatprep.subr.mxu1 %v1930_v51  ;;  %2968 = vmatpush3.msra.mxu0 %v1927_v29 }
 0x24e   :  { %3009 = vmatpush3.msra.mxu1 %v1930_v51  ;;  %2969 = vmatprep.subr.mxu0 %v1926_v8  ;;  %v663_v51 = vadd.f32 %v662_v27, %v577_v12 }
 0x24f   :  { %2994 = vmatprep.subr.mxu1 %v1929_v7  ;;  %2970 = vmatpush3.msra.mxu0 %v1926_v8  ;;  %v2565_v32 = vpop.f32.mrf.mxu1 }
 0x250   :  { %3010 = vmatpush3.msra.mxu1 %v1929_v7  ;;  %2971 = vmatprep.subr.mxu0 %v1925_v9  ;;  %v2603_v34 = vpop.f32.mrf.mxu0  ;;  %v788_v2 = vadd.f32 %v2565_v32, %v477_v3 }
 0x251   :  { %2995 = vmatprep.subr.mxu1 %v1928_v54  ;;  %2972 = vmatpush3.msra.mxu0 %v1925_v9  ;;  %v768_v33 = vpop.f32.mrf.mxu1 }
 0x252   :  { %3011 = vmatpush3.msra.mxu1 %v1928_v54  ;;  %2973 = vmatprep.subr.mxu0 %v1924_v10  ;;  %v878_v38 = vpop.f32.mrf.mxu0  ;;  %v487_v54 = vadd.f32 %v2454_v23, %v2416_v18 }
 0x253   :  { %2996 = vmatprep.subr.mxu1 %v1927_v29  ;;  %2974 = vmatpush3.msra.mxu0 %v1924_v10 }
 0x254   :  { %3012 = vmatpush3.msra.mxu1 %v1927_v29  ;;  %2975 = vmatprep.subr.mxu0 %v1923_v13  ;;  %v898_v29 = vadd.f32 %v2603_v34, %v668_v6 }
 0x255   :  { %2997 = vmatprep.subr.mxu1 %v1926_v8  ;;  %2976 = vmatpush3.msra.mxu0 %v1923_v13  ;;  %v2568_v35 = vpop.f32.mrf.mxu1 }
 0x256   :  { %3013 = vmatpush3.msra.mxu1 %v1926_v8  ;;  %2977 = vmatprep.subr.mxu0 %v1922_v14  ;;  %v2606_v41 = vpop.f32.mrf.mxu0  ;;  %v787_v8 = vadd.f32 %v768_v33, %v472_v5  ;;  %v790_v16 = vadd.f32 %v2568_v35, %v487_v54 }
 0x257   :  { %2998 = vmatprep.subr.mxu1 %v1925_v9  ;;  %2978 = vmatpush3.msra.mxu0 %v1922_v14  ;;  %v778_v39 = vpop.f32.mrf.mxu1 }
 0x258   :  { %3014 = vmatpush3.msra.mxu1 %v1925_v9  ;;  %2979 = vmatprep.subr.mxu0 %v1921_v15  ;;  %v888_v44 = vpop.f32.mrf.mxu0 }
 0x259   :  { %2999 = vmatprep.subr.mxu1 %v1924_v10  ;;  %2980 = vmatpush3.msra.mxu0 %v1921_v15  ;;  %v899_v34 = vadd.f32 %v888_v44, %v673_v24 }
 0x25a   :  { %3015 = vmatpush3.msra.mxu1 %v1924_v10  ;;  %v482_v10 = vadd.f32 %v481_v11, %v396_v22 }
 0x25b   :  { %3000 = vmatprep.subr.mxu1 %v1923_v13 }
 0x25c   :  { %3016 = vmatpush3.msra.mxu1 %v1923_v13  ;;  %v678_v13 = vadd.f32 %v2530_v31, %v2492_v26  ;;  %v789_v3 = vadd.f32 %v778_v39, %v482_v10 }
 0x25d   :  { %3001 = vmatprep.subr.mxu1 %v1922_v14 }
 0x25e   :  { %3017 = vmatpush3.msra.mxu1 %v1922_v14  ;;  %v897_v14 = vadd.f32 %v878_v38, %v663_v51  ;;  %v900_v25 = vadd.f32 %v2606_v41, %v678_v13 }
 0x25f   :  { %3002 = vmatprep.subr.mxu1 %v1921_v15 }
 0x260   :  { %3018 = vmatpush3.msra.mxu1 %v1921_v15 }
 0x273   :  { %v2641_v42 = vpop.f32.mrf.mxu1 }
 0x274   :  { %v2679_v37 = vpop.f32.mrf.mxu0  ;;  %v1008_v9 = vadd.f32 %v2641_v42, %v788_v2 }
 0x275   :  { %v988_v1 = vpop.f32.mrf.mxu1  ;;  %v1118_v36 = vadd.f32 %v2679_v37, %v898_v29 }
 0x276   :  { %v1098_v47 = vpop.f32.mrf.mxu0  ;;  %v1007_v17 = vadd.f32 %v988_v1, %v787_v8 }
 0x277   :  { %v1117_v32 = vadd.f32 %v1098_v47, %v897_v14 }
 0x279   :  { %v2644_v45 = vpop.f32.mrf.mxu1 }
 0x27a   :  { %v2682_v49 = vpop.f32.mrf.mxu0  ;;  %v1010_v27 = vadd.f32 %v2644_v45, %v790_v16 }
 0x27b   :  { %v998_v48 = vpop.f32.mrf.mxu1  ;;  %v1120_v33 = vadd.f32 %v2682_v49, %v900_v25 }
 0x27c   :  { %v1108_v28 = vpop.f32.mrf.mxu0  ;;  %v1009_v42 = vadd.f32 %v998_v48, %v789_v3  ;;  %v2056_v48 = vld [vmem:[%s3335_s4] ss:$0 sm:$0xff] }
 0x27d   :  { %v1119_v1 = vadd.f32 %v1108_v28, %v899_v34 }
 0x297   :  { %v2717_v53 = vpop.f32.mrf.mxu1 }
 0x298   :  { %v2755_v52 = vpop.f32.mrf.mxu0  ;;  %v1228_v21 = vadd.f32 %v2717_v53, %v1008_v9 }
 0x299   :  { %v1208_v50 = vpop.f32.mrf.mxu1  ;;  %v1338_v18 = vadd.f32 %v2755_v52, %v1118_v36 }
 0x29a   :  { %v1318_v19 = vpop.f32.mrf.mxu0  ;;  %v1227_v23 = vadd.f32 %v1208_v50, %v1007_v17  ;;  %v2058_v17 = vld [vmem:[%s3338_s7] ss:$0 sm:$0xff] }
 0x29b   :  { %v1337_v22 = vadd.f32 %v1318_v19, %v1117_v32 }
 0x29d   :  { %v2720_v55 = vpop.f32.mrf.mxu1 }
 0x29e   :  { %v2758_v56 = vpop.f32.mrf.mxu0  ;;  %v1230_v26 = vadd.f32 %v2720_v55, %v1010_v27 }
 0x29f   :  { %v1218_v20 = vpop.f32.mrf.mxu1  ;;  %v1340_v37 = vadd.f32 %v2758_v56, %v1120_v33 }
 0x2a0   :  { %v1328_v58 = vpop.f32.mrf.mxu0  ;;  %v1229_v30 = vadd.f32 %v1218_v20, %v1009_v42 }
 0x2a1   :  { %v1339_v52 = vadd.f32 %v1328_v58, %v1119_v1  ;;  %v2057_v58 = vld [vmem:[%s3336_s5] ss:$0 sm:$0xff] }
 0x2bb   :  { %v2793_v57 = vpop.f32.mrf.mxu1 }
 0x2bc   :  { %v2831_v60 = vpop.f32.mrf.mxu0  ;;  %v1448_v6 = vadd.f32 %v2793_v57, %v1228_v21 }
 0x2bd   :  { %v1428_v59 = vpop.f32.mrf.mxu1  ;;  %v1558_v31 = vadd.f32 %v2831_v60, %v1338_v18 }
 0x2be   :  { %v1538_v62 = vpop.f32.mrf.mxu0  ;;  %v1447_v35 = vadd.f32 %v1428_v59, %v1227_v23 }
 0x2bf   :  { %v1557_v40 = vadd.f32 %v1538_v62, %v1337_v22 }
 0x2c1   :  { %v2796_v61 = vpop.f32.mrf.mxu1 }
 0x2c2   :  { %v2834_v0 = vpop.f32.mrf.mxu0  ;;  %v1450_v47 = vadd.f32 %v2796_v61, %v1230_v26 }
 0x2c3   :  { %v1438_v63 = vpop.f32.mrf.mxu1  ;;  %v1560_v44 = vadd.f32 %v2834_v0, %v1340_v37 }
 0x2c4   :  { %v1548_v46 = vpop.f32.mrf.mxu0  ;;  %v1449_v49 = vadd.f32 %v1438_v63, %v1229_v30 }
 0x2c5   :  { %v1559_v20 = vadd.f32 %v1548_v46, %v1339_v52 }
 0x2df   :  { %v2869_v43 = vpop.f32.mrf.mxu1 }
 0x2e0   :  { %v2907_v7 = vpop.f32.mrf.mxu0  ;;  %v1668_v38 = vadd.f32 %v2869_v43, %v1448_v6 }
 0x2e1   :  { %v1648_v4 = vpop.f32.mrf.mxu1  ;;  %v1778_v45 = vadd.f32 %v2907_v7, %v1558_v31 }
 0x2e2   :  { %v1758_v12 = vpop.f32.mrf.mxu0  ;;  %v1667_v53 = vadd.f32 %v1648_v4, %v1447_v35 }
 0x2e3   :  { %v2872_v15 = vpop.f32.mrf.mxu1  ;;  %v1777_v19 = vadd.f32 %v1758_v12, %v1557_v40 }
 0x2e4   :  { %v2910_v39 = vpop.f32.mrf.mxu0  ;;  %v1670_v57 = vadd.f32 %v2872_v15, %v1450_v47 }
 0x2e5   :  { %v1658_v11 = vpop.f32.mrf.mxu1  ;;  %v1780_v59 = vadd.f32 %v2910_v39, %v1560_v44 }
 0x2e6   :  { %v1768_v60 = vpop.f32.mrf.mxu0  ;;  %v1669_v61 = vadd.f32 %v1658_v11, %v1449_v49 }
 0x2e7   :  { %v1779_v5 = vadd.f32 %v1768_v60, %v1559_v20 }
 0x301   :  { %v2945_v41 = vpop.f32.mrf.mxu1 }
 0x302   :  { %v1888_v50 = vadd.f32 %v2945_v41, %v1668_v38 }
 0x303   :  { %v1868_v55 = vpop.f32.mrf.mxu1 }
 0x304   :  { %v1892_v28 = vadd.f32 %v1888_v50, %v1778_v45  ;;  %v1887_v56 = vadd.f32 %v1868_v55, %v1667_v53 }
 0x305   :  { %v2948_v62 = vpop.f32.mrf.mxu1 }
 0x306   :  { %v1903_v43 = vmul.f32 %v2056_v48, %v1892_v28  ;;  %v1891_v63 = vadd.f32 %v1887_v56, %v1777_v19  ;;  %v1890_v0 = vadd.f32 %v2948_v62, %v1670_v57 }
 0x307   :  { %v1878_v4 = vpop.f32.mrf.mxu1 }
 0x308   :  { %v1902_v2 = vmul.f32 %v2056_v48, %v1891_v63  ;;  %v1894_v51 = vadd.f32 %v1890_v0, %v1780_v59  ;;  %v1889_v7 = vadd.f32 %v1878_v4, %v1669_v61  ;;  %v1914_v54 = vadd.f32 %v2057_v58, %v1903_v43 }
 0x30a   :  { %v1905_v29 = vmul.f32 %v2056_v48, %v1894_v51  ;;  %v1893_v8 = vadd.f32 %v1889_v7, %v1779_v5  ;;  %v1913_v46 = vadd.f32 %v2057_v58, %v1902_v2  ;;  %v1918_v13 = vmax.f32 %v1914_v54, 0.0 }
 0x30c   :  { %v1904_v9 = vmul.f32 %v2056_v48, %v1893_v8  ;;  %v1917_v10 = vmax.f32 %v1913_v46, 0.0  ;;  %v1916_v14 = vadd.f32 %v2057_v58, %v1905_v29 }
 0x30e   :  { %2981 = vmatprep.mubr.f32.mxu0 %v1917_v10  ;;  %v1915_v15 = vadd.f32 %v2057_v58, %v1904_v9  ;;  %v1920_v36 = vmax.f32 %v1916_v14, 0.0 }
 0x30f   :  { %2982 = vmatmul.mubr.f32.vlgmr.msra.gmra.mxu0 %v1918_v13 }
 0x310   :  { %v1919_v16 = vmax.f32 %v1915_v15, 0.0 }
 0x312   :  { %2984 = vmatprep.mubr.f32.mxu1 %v1919_v16 }
 0x313   :  { %2985 = vmatmul.mubr.f32.vlgmr.msra.gmra.mxu1 %v1920_v36 }
 0x3cf   :  { %v2983_v21 = vpop.f32.mrf.mxu0 }
 0x3d0   :  { %v2016_v24 = vadd.f32 %v2983_v21, %v2058_v17 }
 0x3d1   :  { %v2010_v25 = vpop.f32.mrf.mxu0 }
 0x3d2   :  { %2030 = vst [vmem:[#allocation11 + $0x8] sm:$0xff] %v2016_v24  ;;  %v2011_v3 = vadd.f32 %v2058_v17, %v2010_v25 }
 0x3d3   :  { %v2986_v32 = vpop.f32.mrf.mxu1 }
 0x3d4   :  { %2029 = vst [vmem:[#allocation11] sm:$0xff] %v2011_v3  ;;  %v2026_v12 = vadd.f32 %v2986_v32, %v2058_v17 }
 0x3d5   :  { %v2020_v27 = vpop.f32.mrf.mxu1 }
 0x3d6   :  { %2032 = vst [vmem:[#allocation11 + $0x18] sm:$0xff] %v2026_v12  ;;  %v2021_v18 = vadd.f32 %v2058_v17, %v2020_v27 }
 0x3d8   :  { %2031 = vst [vmem:[#allocation11 + $0x10] sm:$0xff] %v2021_v18 }
 0x3d9   :  { %3136 = shalt.err (!%p3133_p10)
}
 0x3da   :  { %2044 = dma.vmem_to_hbm [thread:$0]  %s2039_s9, 512, %s3339_s8, [#allocation5], %s3157_s15, %s3157_s15, %s3158_s16  }
 0x3db   :  { %3151 = dma.done.wait [#allocation5], 512  }
 0x3dc   :  { %3152 = vsyncadd [#allocation5], 4294966784 }
 0x3dd   :  { %2048 = vsyncpa [#allocation4], 1 }
 0x3de   :  { %2049 = vsyncpa [#allocation7], 1 }
 0x3df   :  { %2050 = vsyncpa [#allocation10], 1 }
 0x3e0   :  { %2051 = vsyncpa [#allocation5], 1 }

</bundles_post_ra>
